<compile_context>
chip_gen: v5e
topology: v5e:2x2
jax: 0.10.0
libtpu: 0.0.40
codegen_flags: <defaults>
</compile_context>

<pallas_src>
import math
import functools

import jax
import jax.numpy as jnp
import numpy as np
from jax.experimental import pallas as pl
from jax.experimental.pallas import tpu as pltpu


# ----------------------------- kernel helpers ------------------------------

def _layernorm(v, g, b, eps=1e-5):
    mu = jnp.mean(v, axis=-1, keepdims=True)
    var = jnp.mean((v - mu) ** 2, axis=-1, keepdims=True)
    return (v - mu) * jax.lax.rsqrt(var + eps) * g + b


# --------------------------------- kernel ----------------------------------

def decoder_block_kernel(
    x_ref,
    ln1g, ln1b, ln2g, ln2b, ln3g, ln3b,
    wqkv1, bqkv1, wo1, bo1,
    wqkv2, bqkv2, wo2, bo2,
    wf1, bf1, wf2, bf2,
    y_ref, attn_ref,
    *, n_head, use_encoder,
):
    x = x_ref[0]                                            # (T, C) f32
    T, C = x.shape
    D = C // n_head
    scale = 1.0 / math.sqrt(D)

    # ALiBi + causal bias pieces built in-kernel (cheap VPU/XLU filler).
    ri = jax.lax.broadcasted_iota(jnp.int32, (T, T), 0)     # query index i
    ci = jax.lax.broadcasted_iota(jnp.int32, (T, T), 1)     # key index j
    causal = ci <= ri
    diff = (ci - ri).astype(jnp.float32)                    # j - i (<= 0 on causal)

    def mha(xin, wqkv, bqkv, wo, bo, masked):
        # Fused QKV projection: bf16 inputs, f32 accumulation.
        qkv = jnp.dot(xin.astype(jnp.bfloat16), wqkv[...],
                      preferred_element_type=jnp.float32) + bqkv[...]
        q = (qkv[:, :C] * scale).astype(jnp.bfloat16)       # scale folded once
        k = qkv[:, C:2 * C].astype(jnp.bfloat16)
        v = qkv[:, 2 * C:].astype(jnp.bfloat16)

        head_outs = []
        attn_heads = []
        for h in range(n_head):
            sl = slice(h * D, (h + 1) * D)
            s = jax.lax.dot_general(q[:, sl], k[:, sl],
                                    (((1,), (1,)), ((), ())),
                                    preferred_element_type=jnp.float32)   # (T, T)
            if masked:
                slope = 1.0 / 2 ** (h + 1)
                s = jnp.where(causal, s + slope * diff, -jnp.inf)
            m = jnp.max(s, axis=-1, keepdims=True)
            e = jnp.exp(s - m)
            inv = pl.reciprocal(jnp.sum(e, axis=-1, keepdims=True))       # per-row
            a = e * inv
            attn_heads.append(a)
            head_outs.append(jnp.dot(a.astype(jnp.bfloat16), v[:, sl],
                                     preferred_element_type=jnp.float32))  # (T, D)
        o = jnp.concatenate(head_outs, axis=-1)              # (T, C)
        out = jnp.dot(o.astype(jnp.bfloat16), wo[...],
                      preferred_element_type=jnp.float32) + bo[...]
        return out, attn_heads

    # --- masked self-attention with ALiBi (dropout = identity) ---
    ln1x = _layernorm(x, ln1g[...], ln1b[...])
    attn_out, attn_heads = mha(ln1x, wqkv1, bqkv1, wo1, bo1, masked=True)
    attn_ref[0] = jnp.stack(attn_heads, axis=0)             # single (H,T,T) store
    x = x + attn_out

    # --- "encoder" attention: reproduces the reference bug where encoder_outputs
    # is ignored and K/V come from x (no mask, no ALiBi) ---
    if use_encoder:
        ln2x = _layernorm(x, ln2g[...], ln2b[...])
        enc_out, _ = mha(ln2x, wqkv2, bqkv2, wo2, bo2, masked=False)
        x = x + enc_out

    # --- feed-forward: Linear(C,128-padded-100) -> ReLU -> Linear(128,C) ---
    ln3x = _layernorm(x, ln3g[...], ln3b[...])
    h = jnp.maximum(jnp.dot(ln3x.astype(jnp.bfloat16), wf1[...],
                            preferred_element_type=jnp.float32) + bf1[...], 0.0)
    ff = jnp.dot(h.astype(jnp.bfloat16), wf2[...],
                 preferred_element_type=jnp.float32) + bf2[...]
    y_ref[0] = x + ff


# -------------------------------- wrapper ----------------------------------

def _prep_weights(params):
    """Fuse QKV weights, cast matmul weights to bf16, pad FF hidden dim to 128."""
    bf16, f32 = jnp.bfloat16, jnp.float32
    C = params["wq1"].shape[0]
    hid = params["w_ff1"].shape[1]
    hp = ((hid + 127) // 128) * 128                          # 100 -> 128

    wqkv1 = jnp.concatenate(
        [params["wq1"], params["wk1"], params["wv1"]], axis=1).astype(bf16)
    bqkv1 = jnp.concatenate(
        [params["bq1"], params["bk1"], params["bv1"]], axis=1).astype(f32)
    wqkv2 = jnp.concatenate(
        [params["wq2"], params["wk2"], params["wv2"]], axis=1).astype(bf16)
    bqkv2 = jnp.concatenate(
        [params["bq2"], params["bk2"], params["bv2"]], axis=1).astype(f32)

    wf1 = jnp.zeros((C, hp), f32).at[:, :hid].set(params["w_ff1"]).astype(bf16)
    bf1 = jnp.zeros((1, hp), f32).at[:, :hid].set(params["b_ff1"])
    wf2 = jnp.zeros((hp, C), f32).at[:hid, :].set(params["w_ff2"]).astype(bf16)
    bf2 = params["b_ff2"].astype(f32)

    return dict(
        wqkv1=wqkv1, bqkv1=bqkv1, wo1=params["wo1"].astype(bf16), bo1=params["bo1"],
        wqkv2=wqkv2, bqkv2=bqkv2, wo2=params["wo2"].astype(bf16), bo2=params["bo2"],
        wf1=wf1, bf1=bf1, wf2=wf2, bf2=bf2,
    )


def transformer_decoder_block(x, params, n_head, encoder_outputs=None):
    B, T, C = x.shape
    H = n_head
    use_encoder = encoder_outputs is not None   # encoder_outputs itself unused (reference bug)

    w = _prep_weights(params)

    ins = [
        x,
        params["ln1_g"], params["ln1_b"], params["ln2_g"], params["ln2_b"],
        params["ln3_g"], params["ln3_b"],
        w["wqkv1"], w["bqkv1"], w["wo1"], w["bo1"],
        w["wqkv2"], w["bqkv2"], w["wo2"], w["bo2"],
        w["wf1"], w["bf1"], w["wf2"], w["bf2"],
    ]

    def full_spec(a):
        r = a.ndim
        return pl.BlockSpec(a.shape, lambda b, r=r: (0,) * r)

    in_specs = ([pl.BlockSpec((1, T, C), lambda b: (b, 0, 0))]
                + [full_spec(a) for a in ins[1:]])
    out_specs = (pl.BlockSpec((1, T, C), lambda b: (b, 0, 0)),
                 pl.BlockSpec((1, H, T, T), lambda b: (b, 0, 0, 0)))
    out_shape = (jax.ShapeDtypeStruct((B, T, C), jnp.float32),
                 jax.ShapeDtypeStruct((B, H, T, T), jnp.float32))

    kernel = functools.partial(decoder_block_kernel, n_head=H,
                               use_encoder=use_encoder)
    y, attn = pl.pallas_call(
        kernel,
        grid=(B,),
        in_specs=in_specs,
        out_specs=out_specs,
        out_shape=out_shape,
        compiler_params=pltpu.CompilerParams(
            dimension_semantics=("parallel",),
            vmem_limit_bytes=32 * 1024 * 1024,
        ),
    )(*ins)
    return y, attn


# ------------------------- deterministic parameters -------------------------

def init_params(key, n_embd, hidden=100):
    ks = jax.random.split(key, 12)

    def w(k, shape):
        return (0.02 * jax.random.normal(k, shape)).astype(jnp.float32)

    z = lambda n: jnp.zeros((1, n), jnp.float32)
    one = lambda n: jnp.ones((1, n), jnp.float32)
    C = n_embd
    return {
        "ln1_g": one(C), "ln1_b": z(C),
        "ln2_g": one(C), "ln2_b": z(C),
        "ln3_g": one(C), "ln3_b": z(C),
        "wq1": w(ks[0], (C, C)), "bq1": z(C),
        "wk1": w(ks[1], (C, C)), "bk1": z(C),
        "wv1": w(ks[2], (C, C)), "bv1": z(C),
        "wo1": w(ks[3], (C, C)), "bo1": z(C),
        "wq2": w(ks[4], (C, C)), "bq2": z(C),
        "wk2": w(ks[5], (C, C)), "bk2": z(C),
        "wv2": w(ks[6], (C, C)), "bv2": z(C),
        "wo2": w(ks[7], (C, C)), "bo2": z(C),
        "w_ff1": w(ks[8], (C, hidden)), "b_ff1": z(hidden),
        "w_ff2": w(ks[9], (hidden, C)), "b_ff2": z(C),
    }


# ------------------------------ pure-JAX ref --------------------------------

def _alibi_causal_bias(n_head, T):
    """Combined ALiBi + causal additive bias, shape (H, T, T) — reference only."""
    slopes = jnp.array([1.0 / 2 ** i for i in range(1, n_head + 1)],
                       jnp.float32)[:, None, None]
    pos = jnp.arange(T, dtype=jnp.float32)
    diff = pos[None, :] - pos[:, None]                      # diff[i, j] = j - i
    causal = jnp.tril(jnp.ones((T, T), jnp.float32))
    alibi = slopes * (diff * causal)[None, :, :]
    return jnp.where(causal[None, :, :] == 0.0, -jnp.inf, alibi)


def reference(x, params, n_head, use_encoder=True):
    B, T, C = x.shape
    D = C // n_head

    def ln(v, g, b):
        mu = jnp.mean(v, -1, keepdims=True)
        var = jnp.mean((v - mu) ** 2, -1, keepdims=True)
        return (v - mu) / jnp.sqrt(var + 1e-5) * g + b

    def mha(xin, wq, bq, wk, bk, wv, bv, wo, bo, bias):
        q = (xin @ wq + bq).reshape(B, T, n_head, D).transpose(0, 2, 1, 3)
        k = (xin @ wk + bk).reshape(B, T, n_head, D).transpose(0, 2, 1, 3)
        v = (xin @ wv + bv).reshape(B, T, n_head, D).transpose(0, 2, 1, 3)
        s = jnp.einsum("bhqd,bhkd->bhqk", q, k) / math.sqrt(D)
        if bias is not None:
            s = s + bias[None]
        a = jax.nn.softmax(s, axis=-1)
        o = jnp.einsum("bhqk,bhkd->bhqd", a, v).transpose(0, 2, 1, 3).reshape(B, T, C)
        return o @ wo + bo, a

    p = params
    bias = _alibi_causal_bias(n_head, T)
    attn_out, attn = mha(ln(x, p["ln1_g"], p["ln1_b"]),
                         p["wq1"], p["bq1"], p["wk1"], p["bk1"],
                         p["wv1"], p["bv1"], p["wo1"], p["bo1"], bias)
    x = x + attn_out
    if use_encoder:
        enc_out, _ = mha(ln(x, p["ln2_g"], p["ln2_b"]),
                         p["wq2"], p["bq2"], p["wk2"], p["bk2"],
                         p["wv2"], p["bv2"], p["wo2"], p["bo2"], None)
        x = x + enc_out
    ln3x = ln(x, p["ln3_g"], p["ln3_b"])
    ff = jnp.maximum(ln3x @ p["w_ff1"] + p["b_ff1"], 0.0) @ p["w_ff2"] + p["b_ff2"]
    return x + ff, attn


# ---------------------------------- main ------------------------------------

if __name__ == "__main__":
    B, T, C, H = 2, 8, 32, 4
    key = jax.random.PRNGKey(0)
    kx, kenc, kp = jax.random.split(key, 3)

    x = jax.random.normal(kx, (B, T, C), jnp.float32)
    # encoder_outputs is accepted but (as in the PyTorch reference) never used.
    encoder_outputs = jax.random.normal(kenc, (B, T, C), jnp.float32)
    params = init_params(kp, C)

    y, attn = transformer_decoder_block(x, params, n_head=H,
                                        encoder_outputs=encoder_outputs)
    y = jax.block_until_ready(y)
    attn = jax.block_until_ready(attn)

    y_ref, attn_ref = reference(x, params, n_head=H, use_encoder=True)
    # bf16-input matmuls (f32 accumulation) => tolerances looser than pure-f32.
    np.testing.assert_allclose(np.asarray(y), np.asarray(y_ref), atol=1e-2, rtol=1e-2)
    np.testing.assert_allclose(np.asarray(attn), np.asarray(attn_ref), atol=5e-3, rtol=1e-2)

    assert y.shape == (B, T, C) and attn.shape == (B, H, T, T)
    print("KERNEL_OK")
</pallas_src>

<mosaic_0001>
module attributes {stable_mosaic.version = 11 : i64} {
  func.func @decoder_block_kernel(%arg0: i32, %arg1: memref<1x8x32xf32, #tpu.memory_space<vmem>>, %arg2: memref<1x32xf32, #tpu.memory_space<vmem>>, %arg3: memref<1x32xf32, #tpu.memory_space<vmem>>, %arg4: memref<1x32xf32, #tpu.memory_space<vmem>>, %arg5: memref<1x32xf32, #tpu.memory_space<vmem>>, %arg6: memref<1x32xf32, #tpu.memory_space<vmem>>, %arg7: memref<1x32xf32, #tpu.memory_space<vmem>>, %arg8: memref<32x96xbf16, #tpu.memory_space<vmem>>, %arg9: memref<1x96xf32, #tpu.memory_space<vmem>>, %arg10: memref<32x32xbf16, #tpu.memory_space<vmem>>, %arg11: memref<1x32xf32, #tpu.memory_space<vmem>>, %arg12: memref<32x96xbf16, #tpu.memory_space<vmem>>, %arg13: memref<1x96xf32, #tpu.memory_space<vmem>>, %arg14: memref<32x32xbf16, #tpu.memory_space<vmem>>, %arg15: memref<1x32xf32, #tpu.memory_space<vmem>>, %arg16: memref<32x128xbf16, #tpu.memory_space<vmem>>, %arg17: memref<1x128xf32, #tpu.memory_space<vmem>>, %arg18: memref<128x32xbf16, #tpu.memory_space<vmem>>, %arg19: memref<1x32xf32, #tpu.memory_space<vmem>>, %arg20: memref<1x8x32xf32, #tpu.memory_space<vmem>>, %arg21: memref<1x4x8x8xf32, #tpu.memory_space<vmem>>) attributes {dimension_semantics = [#tpu.dimension_semantics<parallel>], iteration_bounds = array<i64: 2>, scalar_prefetch = 0 : i64, scratch_operands = 0 : i64, tpu.core_type = #tpu.core_type<tc>, window_params = [{transform_indices = @transform_0, window_bounds = array<i64: 1, 8, 32>}, {pipeline_mode = #tpu.pipeline_mode<synchronous>, transform_indices = @transform_1, window_bounds = array<i64: 1, 32>}, {pipeline_mode = #tpu.pipeline_mode<synchronous>, transform_indices = @transform_2, window_bounds = array<i64: 1, 32>}, {pipeline_mode = #tpu.pipeline_mode<synchronous>, transform_indices = @transform_3, window_bounds = array<i64: 1, 32>}, {pipeline_mode = #tpu.pipeline_mode<synchronous>, transform_indices = @transform_4, window_bounds = array<i64: 1, 32>}, {pipeline_mode = #tpu.pipeline_mode<synchronous>, transform_indices = @transform_5, window_bounds = array<i64: 1, 32>}, {pipeline_mode = #tpu.pipeline_mode<synchronous>, transform_indices = @transform_6, window_bounds = array<i64: 1, 32>}, {pipeline_mode = #tpu.pipeline_mode<synchronous>, transform_indices = @transform_7, window_bounds = array<i64: 32, 96>}, {pipeline_mode = #tpu.pipeline_mode<synchronous>, transform_indices = @transform_8, window_bounds = array<i64: 1, 96>}, {pipeline_mode = #tpu.pipeline_mode<synchronous>, transform_indices = @transform_9, window_bounds = array<i64: 32, 32>}, {pipeline_mode = #tpu.pipeline_mode<synchronous>, transform_indices = @transform_10, window_bounds = array<i64: 1, 32>}, {pipeline_mode = #tpu.pipeline_mode<synchronous>, transform_indices = @transform_11, window_bounds = array<i64: 32, 96>}, {pipeline_mode = #tpu.pipeline_mode<synchronous>, transform_indices = @transform_12, window_bounds = array<i64: 1, 96>}, {pipeline_mode = #tpu.pipeline_mode<synchronous>, transform_indices = @transform_13, window_bounds = array<i64: 32, 32>}, {pipeline_mode = #tpu.pipeline_mode<synchronous>, transform_indices = @transform_14, window_bounds = array<i64: 1, 32>}, {pipeline_mode = #tpu.pipeline_mode<synchronous>, transform_indices = @transform_15, window_bounds = array<i64: 32, 128>}, {pipeline_mode = #tpu.pipeline_mode<synchronous>, transform_indices = @transform_16, window_bounds = array<i64: 1, 128>}, {pipeline_mode = #tpu.pipeline_mode<synchronous>, transform_indices = @transform_17, window_bounds = array<i64: 128, 32>}, {pipeline_mode = #tpu.pipeline_mode<synchronous>, transform_indices = @transform_18, window_bounds = array<i64: 1, 32>}, {transform_indices = @transform_19, window_bounds = array<i64: 1, 8, 32>}, {transform_indices = @transform_20, window_bounds = array<i64: 1, 4, 8, 8>}]} {
    %c0 = arith.constant 0 : index
    %c0_0 = arith.constant 0 : index
    %c0_1 = arith.constant 0 : index
    %0 = vector.load %arg1[%c0, %c0_0, %c0_1] : memref<1x8x32xf32, #tpu.memory_space<vmem>>, vector<1x8x32xf32>
    %1 = vector.shape_cast %0 : vector<1x8x32xf32> to vector<8x32xf32>
    %2 = tpu.iota {dimensions = array<i32: 0>} : vector<8x8xi32>
    %3 = tpu.iota {dimensions = array<i32: 1>} : vector<8x8xi32>
    %4 = arith.cmpi sle, %3, %2 : vector<8x8xi32>
    %5 = arith.subi %3, %2 : vector<8x8xi32>
    %6 = arith.sitofp %5 : vector<8x8xi32> to vector<8x8xf32>
    %c0_2 = arith.constant 0 : index
    %c0_3 = arith.constant 0 : index
    %7 = vector.load %arg2[%c0_2, %c0_3] : memref<1x32xf32, #tpu.memory_space<vmem>>, vector<1x32xf32>
    %c0_4 = arith.constant 0 : index
    %c0_5 = arith.constant 0 : index
    %8 = vector.load %arg3[%c0_4, %c0_5] : memref<1x32xf32, #tpu.memory_space<vmem>>, vector<1x32xf32>
    %cst = arith.constant dense<0.000000e+00> : vector<8xf32>
    %9 = vector.multi_reduction <add>, %1, %cst [1] : vector<8x32xf32> to vector<8xf32>
    %10 = vector.shape_cast %9 : vector<8xf32> to vector<8x1xf32>
    %cst_6 = arith.constant 3.200000e+01 : f32
    %11 = vector.broadcast %cst_6 : f32 to vector<8x1xf32>
    %12 = arith.divf %10, %11 : vector<8x1xf32>
    %13 = vector.broadcast %12 : vector<8x1xf32> to vector<8x32xf32>
    %14 = arith.subf %1, %13 : vector<8x32xf32>
    %15 = arith.mulf %14, %14 : vector<8x32xf32>
    %cst_7 = arith.constant dense<0.000000e+00> : vector<8xf32>
    %16 = vector.multi_reduction <add>, %15, %cst_7 [1] : vector<8x32xf32> to vector<8xf32>
    %17 = vector.shape_cast %16 : vector<8xf32> to vector<8x1xf32>
    %cst_8 = arith.constant 3.200000e+01 : f32
    %18 = vector.broadcast %cst_8 : f32 to vector<8x1xf32>
    %19 = arith.divf %17, %18 : vector<8x1xf32>
    %20 = vector.broadcast %12 : vector<8x1xf32> to vector<8x32xf32>
    %21 = arith.subf %1, %20 : vector<8x32xf32>
    %cst_9 = arith.constant 9.99999974E-6 : f32
    %22 = vector.broadcast %cst_9 : f32 to vector<8x1xf32>
    %23 = arith.addf %19, %22 : vector<8x1xf32>
    %24 = math.rsqrt %23 : vector<8x1xf32>
    %25 = vector.broadcast %24 : vector<8x1xf32> to vector<8x32xf32>
    %26 = arith.mulf %21, %25 : vector<8x32xf32>
    %27 = vector.broadcast %7 : vector<1x32xf32> to vector<8x32xf32>
    %28 = arith.mulf %26, %27 : vector<8x32xf32>
    %29 = vector.broadcast %8 : vector<1x32xf32> to vector<8x32xf32>
    %30 = arith.addf %28, %29 : vector<8x32xf32>
    %31 = arith.truncf %30 : vector<8x32xf32> to vector<8x32xbf16>
    %c0_10 = arith.constant 0 : index
    %c0_11 = arith.constant 0 : index
    %32 = vector.load %arg8[%c0_10, %c0_11] : memref<32x96xbf16, #tpu.memory_space<vmem>>, vector<32x96xbf16>
    %cst_12 = arith.constant dense<0.000000e+00> : vector<8x96xf32>
    %33 = tpu.matmul %31, %32, %cst_12 {dimension_numbers = #tpu.dot_dimension_numbers<[1], [0], [0], [1], [0, 0, 1, 1], [], []>} : vector<8x32xbf16>, vector<32x96xbf16>, vector<8x96xf32> -> vector<8x96xf32>
    %c0_13 = arith.constant 0 : index
    %c0_14 = arith.constant 0 : index
    %34 = vector.load %arg9[%c0_13, %c0_14] : memref<1x96xf32, #tpu.memory_space<vmem>>, vector<1x96xf32>
    %35 = vector.broadcast %34 : vector<1x96xf32> to vector<8x96xf32>
    %36 = arith.addf %33, %35 : vector<8x96xf32>
    %37 = vector.extract_strided_slice %36 {offsets = [0, 0], sizes = [8, 32], strides = [1, 1]} : vector<8x96xf32> to vector<8x32xf32>
    %cst_15 = arith.constant 0.353553385 : f32
    %38 = vector.broadcast %cst_15 : f32 to vector<8x32xf32>
    %39 = arith.mulf %37, %38 : vector<8x32xf32>
    %40 = arith.truncf %39 : vector<8x32xf32> to vector<8x32xbf16>
    %41 = vector.extract_strided_slice %36 {offsets = [0, 32], sizes = [8, 32], strides = [1, 1]} : vector<8x96xf32> to vector<8x32xf32>
    %42 = arith.truncf %41 : vector<8x32xf32> to vector<8x32xbf16>
    %43 = vector.extract_strided_slice %36 {offsets = [0, 64], sizes = [8, 32], strides = [1, 1]} : vector<8x96xf32> to vector<8x32xf32>
    %44 = arith.truncf %43 : vector<8x32xf32> to vector<8x32xbf16>
    %45 = vector.extract_strided_slice %40 {offsets = [0, 0], sizes = [8, 8], strides = [1, 1]} : vector<8x32xbf16> to vector<8x8xbf16>
    %46 = vector.extract_strided_slice %42 {offsets = [0, 0], sizes = [8, 8], strides = [1, 1]} : vector<8x32xbf16> to vector<8x8xbf16>
    %cst_16 = arith.constant dense<0.000000e+00> : vector<8x8xf32>
    %47 = tpu.matmul %45, %46, %cst_16 {dimension_numbers = #tpu.dot_dimension_numbers<[1], [1], [0], [0], [0, 0, 1, 0], [], []>} : vector<8x8xbf16>, vector<8x8xbf16>, vector<8x8xf32> -> vector<8x8xf32>
    %cst_17 = arith.constant 5.000000e-01 : f32
    %48 = vector.broadcast %cst_17 : f32 to vector<8x8xf32>
    %49 = arith.mulf %48, %6 : vector<8x8xf32>
    %50 = arith.addf %47, %49 : vector<8x8xf32>
    %cst_18 = arith.constant 0xFF800000 : f32
    %51 = vector.broadcast %cst_18 : f32 to vector<8x8xf32>
    %52 = arith.select %4, %50, %51 : vector<8x8xi1>, vector<8x8xf32>
    %cst_19 = arith.constant dense<0xFF800000> : vector<8xf32>
    %53 = vector.multi_reduction <maximumf>, %52, %cst_19 [1] : vector<8x8xf32> to vector<8xf32>
    %54 = vector.shape_cast %53 : vector<8xf32> to vector<8x1xf32>
    %55 = vector.broadcast %54 : vector<8x1xf32> to vector<8x8xf32>
    %56 = arith.subf %52, %55 : vector<8x8xf32>
    %57 = math.exp %56 : vector<8x8xf32>
    %cst_20 = arith.constant dense<0.000000e+00> : vector<8xf32>
    %58 = vector.multi_reduction <add>, %57, %cst_20 [1] : vector<8x8xf32> to vector<8xf32>
    %59 = vector.shape_cast %58 : vector<8xf32> to vector<8x1xf32>
    %60 = tpu.reciprocal %59 : vector<8x1xf32> -> vector<8x1xf32>
    %61 = vector.broadcast %60 : vector<8x1xf32> to vector<8x8xf32>
    %62 = arith.mulf %57, %61 : vector<8x8xf32>
    %63 = arith.truncf %62 : vector<8x8xf32> to vector<8x8xbf16>
    %64 = vector.extract_strided_slice %44 {offsets = [0, 0], sizes = [8, 8], strides = [1, 1]} : vector<8x32xbf16> to vector<8x8xbf16>
    %cst_21 = arith.constant dense<0.000000e+00> : vector<8x8xf32>
    %65 = tpu.matmul %63, %64, %cst_21 {dimension_numbers = #tpu.dot_dimension_numbers<[1], [0], [0], [1], [0, 0, 1, 1], [], []>} : vector<8x8xbf16>, vector<8x8xbf16>, vector<8x8xf32> -> vector<8x8xf32>
    %66 = vector.extract_strided_slice %40 {offsets = [0, 8], sizes = [8, 8], strides = [1, 1]} : vector<8x32xbf16> to vector<8x8xbf16>
    %67 = vector.extract_strided_slice %42 {offsets = [0, 8], sizes = [8, 8], strides = [1, 1]} : vector<8x32xbf16> to vector<8x8xbf16>
    %cst_22 = arith.constant dense<0.000000e+00> : vector<8x8xf32>
    %68 = tpu.matmul %66, %67, %cst_22 {dimension_numbers = #tpu.dot_dimension_numbers<[1], [1], [0], [0], [0, 0, 1, 0], [], []>} : vector<8x8xbf16>, vector<8x8xbf16>, vector<8x8xf32> -> vector<8x8xf32>
    %cst_23 = arith.constant 2.500000e-01 : f32
    %69 = vector.broadcast %cst_23 : f32 to vector<8x8xf32>
    %70 = arith.mulf %69, %6 : vector<8x8xf32>
    %71 = arith.addf %68, %70 : vector<8x8xf32>
    %cst_24 = arith.constant 0xFF800000 : f32
    %72 = vector.broadcast %cst_24 : f32 to vector<8x8xf32>
    %73 = arith.select %4, %71, %72 : vector<8x8xi1>, vector<8x8xf32>
    %cst_25 = arith.constant dense<0xFF800000> : vector<8xf32>
    %74 = vector.multi_reduction <maximumf>, %73, %cst_25 [1] : vector<8x8xf32> to vector<8xf32>
    %75 = vector.shape_cast %74 : vector<8xf32> to vector<8x1xf32>
    %76 = vector.broadcast %75 : vector<8x1xf32> to vector<8x8xf32>
    %77 = arith.subf %73, %76 : vector<8x8xf32>
    %78 = math.exp %77 : vector<8x8xf32>
    %cst_26 = arith.constant dense<0.000000e+00> : vector<8xf32>
    %79 = vector.multi_reduction <add>, %78, %cst_26 [1] : vector<8x8xf32> to vector<8xf32>
    %80 = vector.shape_cast %79 : vector<8xf32> to vector<8x1xf32>
    %81 = tpu.reciprocal %80 : vector<8x1xf32> -> vector<8x1xf32>
    %82 = vector.broadcast %81 : vector<8x1xf32> to vector<8x8xf32>
    %83 = arith.mulf %78, %82 : vector<8x8xf32>
    %84 = arith.truncf %83 : vector<8x8xf32> to vector<8x8xbf16>
    %85 = vector.extract_strided_slice %44 {offsets = [0, 8], sizes = [8, 8], strides = [1, 1]} : vector<8x32xbf16> to vector<8x8xbf16>
    %cst_27 = arith.constant dense<0.000000e+00> : vector<8x8xf32>
    %86 = tpu.matmul %84, %85, %cst_27 {dimension_numbers = #tpu.dot_dimension_numbers<[1], [0], [0], [1], [0, 0, 1, 1], [], []>} : vector<8x8xbf16>, vector<8x8xbf16>, vector<8x8xf32> -> vector<8x8xf32>
    %87 = vector.extract_strided_slice %40 {offsets = [0, 16], sizes = [8, 8], strides = [1, 1]} : vector<8x32xbf16> to vector<8x8xbf16>
    %88 = vector.extract_strided_slice %42 {offsets = [0, 16], sizes = [8, 8], strides = [1, 1]} : vector<8x32xbf16> to vector<8x8xbf16>
    %cst_28 = arith.constant dense<0.000000e+00> : vector<8x8xf32>
    %89 = tpu.matmul %87, %88, %cst_28 {dimension_numbers = #tpu.dot_dimension_numbers<[1], [1], [0], [0], [0, 0, 1, 0], [], []>} : vector<8x8xbf16>, vector<8x8xbf16>, vector<8x8xf32> -> vector<8x8xf32>
    %cst_29 = arith.constant 1.250000e-01 : f32
    %90 = vector.broadcast %cst_29 : f32 to vector<8x8xf32>
    %91 = arith.mulf %90, %6 : vector<8x8xf32>
    %92 = arith.addf %89, %91 : vector<8x8xf32>
    %cst_30 = arith.constant 0xFF800000 : f32
    %93 = vector.broadcast %cst_30 : f32 to vector<8x8xf32>
    %94 = arith.select %4, %92, %93 : vector<8x8xi1>, vector<8x8xf32>
    %cst_31 = arith.constant dense<0xFF800000> : vector<8xf32>
    %95 = vector.multi_reduction <maximumf>, %94, %cst_31 [1] : vector<8x8xf32> to vector<8xf32>
    %96 = vector.shape_cast %95 : vector<8xf32> to vector<8x1xf32>
    %97 = vector.broadcast %96 : vector<8x1xf32> to vector<8x8xf32>
    %98 = arith.subf %94, %97 : vector<8x8xf32>
    %99 = math.exp %98 : vector<8x8xf32>
    %cst_32 = arith.constant dense<0.000000e+00> : vector<8xf32>
    %100 = vector.multi_reduction <add>, %99, %cst_32 [1] : vector<8x8xf32> to vector<8xf32>
    %101 = vector.shape_cast %100 : vector<8xf32> to vector<8x1xf32>
    %102 = tpu.reciprocal %101 : vector<8x1xf32> -> vector<8x1xf32>
    %103 = vector.broadcast %102 : vector<8x1xf32> to vector<8x8xf32>
    %104 = arith.mulf %99, %103 : vector<8x8xf32>
    %105 = arith.truncf %104 : vector<8x8xf32> to vector<8x8xbf16>
    %106 = vector.extract_strided_slice %44 {offsets = [0, 16], sizes = [8, 8], strides = [1, 1]} : vector<8x32xbf16> to vector<8x8xbf16>
    %cst_33 = arith.constant dense<0.000000e+00> : vector<8x8xf32>
    %107 = tpu.matmul %105, %106, %cst_33 {dimension_numbers = #tpu.dot_dimension_numbers<[1], [0], [0], [1], [0, 0, 1, 1], [], []>} : vector<8x8xbf16>, vector<8x8xbf16>, vector<8x8xf32> -> vector<8x8xf32>
    %108 = vector.extract_strided_slice %40 {offsets = [0, 24], sizes = [8, 8], strides = [1, 1]} : vector<8x32xbf16> to vector<8x8xbf16>
    %109 = vector.extract_strided_slice %42 {offsets = [0, 24], sizes = [8, 8], strides = [1, 1]} : vector<8x32xbf16> to vector<8x8xbf16>
    %cst_34 = arith.constant dense<0.000000e+00> : vector<8x8xf32>
    %110 = tpu.matmul %108, %109, %cst_34 {dimension_numbers = #tpu.dot_dimension_numbers<[1], [1], [0], [0], [0, 0, 1, 0], [], []>} : vector<8x8xbf16>, vector<8x8xbf16>, vector<8x8xf32> -> vector<8x8xf32>
    %cst_35 = arith.constant 6.250000e-02 : f32
    %111 = vector.broadcast %cst_35 : f32 to vector<8x8xf32>
    %112 = arith.mulf %111, %6 : vector<8x8xf32>
    %113 = arith.addf %110, %112 : vector<8x8xf32>
    %cst_36 = arith.constant 0xFF800000 : f32
    %114 = vector.broadcast %cst_36 : f32 to vector<8x8xf32>
    %115 = arith.select %4, %113, %114 : vector<8x8xi1>, vector<8x8xf32>
    %cst_37 = arith.constant dense<0xFF800000> : vector<8xf32>
    %116 = vector.multi_reduction <maximumf>, %115, %cst_37 [1] : vector<8x8xf32> to vector<8xf32>
    %117 = vector.shape_cast %116 : vector<8xf32> to vector<8x1xf32>
    %118 = vector.broadcast %117 : vector<8x1xf32> to vector<8x8xf32>
    %119 = arith.subf %115, %118 : vector<8x8xf32>
    %120 = math.exp %119 : vector<8x8xf32>
    %cst_38 = arith.constant dense<0.000000e+00> : vector<8xf32>
    %121 = vector.multi_reduction <add>, %120, %cst_38 [1] : vector<8x8xf32> to vector<8xf32>
    %122 = vector.shape_cast %121 : vector<8xf32> to vector<8x1xf32>
    %123 = tpu.reciprocal %122 : vector<8x1xf32> -> vector<8x1xf32>
    %124 = vector.broadcast %123 : vector<8x1xf32> to vector<8x8xf32>
    %125 = arith.mulf %120, %124 : vector<8x8xf32>
    %126 = arith.truncf %125 : vector<8x8xf32> to vector<8x8xbf16>
    %127 = vector.extract_strided_slice %44 {offsets = [0, 24], sizes = [8, 8], strides = [1, 1]} : vector<8x32xbf16> to vector<8x8xbf16>
    %cst_39 = arith.constant dense<0.000000e+00> : vector<8x8xf32>
    %128 = tpu.matmul %126, %127, %cst_39 {dimension_numbers = #tpu.dot_dimension_numbers<[1], [0], [0], [1], [0, 0, 1, 1], [], []>} : vector<8x8xbf16>, vector<8x8xbf16>, vector<8x8xf32> -> vector<8x8xf32>
    %129 = tpu.concatenate %65, %86, %107, %128 in 1 : vector<8x8xf32>, vector<8x8xf32>, vector<8x8xf32>, vector<8x8xf32> -> vector<8x32xf32>
    %130 = arith.truncf %129 : vector<8x32xf32> to vector<8x32xbf16>
    %c0_40 = arith.constant 0 : index
    %c0_41 = arith.constant 0 : index
    %131 = vector.load %arg10[%c0_40, %c0_41] : memref<32x32xbf16, #tpu.memory_space<vmem>>, vector<32x32xbf16>
    %cst_42 = arith.constant dense<0.000000e+00> : vector<8x32xf32>
    %132 = tpu.matmul %130, %131, %cst_42 {dimension_numbers = #tpu.dot_dimension_numbers<[1], [0], [0], [1], [0, 0, 1, 1], [], []>} : vector<8x32xbf16>, vector<32x32xbf16>, vector<8x32xf32> -> vector<8x32xf32>
    %c0_43 = arith.constant 0 : index
    %c0_44 = arith.constant 0 : index
    %133 = vector.load %arg11[%c0_43, %c0_44] : memref<1x32xf32, #tpu.memory_space<vmem>>, vector<1x32xf32>
    %134 = vector.broadcast %133 : vector<1x32xf32> to vector<8x32xf32>
    %135 = arith.addf %132, %134 : vector<8x32xf32>
    %136 = vector.shape_cast %62 : vector<8x8xf32> to vector<1x8x8xf32>
    %137 = vector.shape_cast %83 : vector<8x8xf32> to vector<1x8x8xf32>
    %138 = vector.shape_cast %104 : vector<8x8xf32> to vector<1x8x8xf32>
    %139 = vector.shape_cast %125 : vector<8x8xf32> to vector<1x8x8xf32>
    %140 = tpu.concatenate %136, %137, %138, %139 in 0 : vector<1x8x8xf32>, vector<1x8x8xf32>, vector<1x8x8xf32>, vector<1x8x8xf32> -> vector<4x8x8xf32>
    %c0_45 = arith.constant 0 : index
    %c0_46 = arith.constant 0 : index
    %c0_47 = arith.constant 0 : index
    %c0_48 = arith.constant 0 : index
    %141 = vector.load %arg21[%c0_45, %c0_46, %c0_47, %c0_48] : memref<1x4x8x8xf32, #tpu.memory_space<vmem>>, vector<1x4x8x8xf32>
    %142 = vector.shape_cast %141 : vector<1x4x8x8xf32> to vector<4x8x8xf32>
    %143 = vector.shape_cast %140 : vector<4x8x8xf32> to vector<1x4x8x8xf32>
    tpu.vector_store %arg21[%c0_45, %c0_46, %c0_47, %c0_48], %143 {strides = array<i32>} : memref<1x4x8x8xf32, #tpu.memory_space<vmem>>, vector<1x4x8x8xf32>,
    %144 = arith.addf %1, %135 : vector<8x32xf32>
    %c0_49 = arith.constant 0 : index
    %c0_50 = arith.constant 0 : index
    %145 = vector.load %arg4[%c0_49, %c0_50] : memref<1x32xf32, #tpu.memory_space<vmem>>, vector<1x32xf32>
    %c0_51 = arith.constant 0 : index
    %c0_52 = arith.constant 0 : index
    %146 = vector.load %arg5[%c0_51, %c0_52] : memref<1x32xf32, #tpu.memory_space<vmem>>, vector<1x32xf32>
    %cst_53 = arith.constant dense<0.000000e+00> : vector<8xf32>
    %147 = vector.multi_reduction <add>, %144, %cst_53 [1] : vector<8x32xf32> to vector<8xf32>
    %148 = vector.shape_cast %147 : vector<8xf32> to vector<8x1xf32>
    %cst_54 = arith.constant 3.200000e+01 : f32
    %149 = vector.broadcast %cst_54 : f32 to vector<8x1xf32>
    %150 = arith.divf %148, %149 : vector<8x1xf32>
    %151 = vector.broadcast %150 : vector<8x1xf32> to vector<8x32xf32>
    %152 = arith.subf %144, %151 : vector<8x32xf32>
    %153 = arith.mulf %152, %152 : vector<8x32xf32>
    %cst_55 = arith.constant dense<0.000000e+00> : vector<8xf32>
    %154 = vector.multi_reduction <add>, %153, %cst_55 [1] : vector<8x32xf32> to vector<8xf32>
    %155 = vector.shape_cast %154 : vector<8xf32> to vector<8x1xf32>
    %cst_56 = arith.constant 3.200000e+01 : f32
    %156 = vector.broadcast %cst_56 : f32 to vector<8x1xf32>
    %157 = arith.divf %155, %156 : vector<8x1xf32>
    %158 = vector.broadcast %150 : vector<8x1xf32> to vector<8x32xf32>
    %159 = arith.subf %144, %158 : vector<8x32xf32>
    %cst_57 = arith.constant 9.99999974E-6 : f32
    %160 = vector.broadcast %cst_57 : f32 to vector<8x1xf32>
    %161 = arith.addf %157, %160 : vector<8x1xf32>
    %162 = math.rsqrt %161 : vector<8x1xf32>
    %163 = vector.broadcast %162 : vector<8x1xf32> to vector<8x32xf32>
    %164 = arith.mulf %159, %163 : vector<8x32xf32>
    %165 = vector.broadcast %145 : vector<1x32xf32> to vector<8x32xf32>
    %166 = arith.mulf %164, %165 : vector<8x32xf32>
    %167 = vector.broadcast %146 : vector<1x32xf32> to vector<8x32xf32>
    %168 = arith.addf %166, %167 : vector<8x32xf32>
    %169 = arith.truncf %168 : vector<8x32xf32> to vector<8x32xbf16>
    %c0_58 = arith.constant 0 : index
    %c0_59 = arith.constant 0 : index
    %170 = vector.load %arg12[%c0_58, %c0_59] : memref<32x96xbf16, #tpu.memory_space<vmem>>, vector<32x96xbf16>
    %cst_60 = arith.constant dense<0.000000e+00> : vector<8x96xf32>
    %171 = tpu.matmul %169, %170, %cst_60 {dimension_numbers = #tpu.dot_dimension_numbers<[1], [0], [0], [1], [0, 0, 1, 1], [], []>} : vector<8x32xbf16>, vector<32x96xbf16>, vector<8x96xf32> -> vector<8x96xf32>
    %c0_61 = arith.constant 0 : index
    %c0_62 = arith.constant 0 : index
    %172 = vector.load %arg13[%c0_61, %c0_62] : memref<1x96xf32, #tpu.memory_space<vmem>>, vector<1x96xf32>
    %173 = vector.broadcast %172 : vector<1x96xf32> to vector<8x96xf32>
    %174 = arith.addf %171, %173 : vector<8x96xf32>
    %175 = vector.extract_strided_slice %174 {offsets = [0, 0], sizes = [8, 32], strides = [1, 1]} : vector<8x96xf32> to vector<8x32xf32>
    %cst_63 = arith.constant 0.353553385 : f32
    %176 = vector.broadcast %cst_63 : f32 to vector<8x32xf32>
    %177 = arith.mulf %175, %176 : vector<8x32xf32>
    %178 = arith.truncf %177 : vector<8x32xf32> to vector<8x32xbf16>
    %179 = vector.extract_strided_slice %174 {offsets = [0, 32], sizes = [8, 32], strides = [1, 1]} : vector<8x96xf32> to vector<8x32xf32>
    %180 = arith.truncf %179 : vector<8x32xf32> to vector<8x32xbf16>
    %181 = vector.extract_strided_slice %174 {offsets = [0, 64], sizes = [8, 32], strides = [1, 1]} : vector<8x96xf32> to vector<8x32xf32>
    %182 = arith.truncf %181 : vector<8x32xf32> to vector<8x32xbf16>
    %183 = vector.extract_strided_slice %178 {offsets = [0, 0], sizes = [8, 8], strides = [1, 1]} : vector<8x32xbf16> to vector<8x8xbf16>
    %184 = vector.extract_strided_slice %180 {offsets = [0, 0], sizes = [8, 8], strides = [1, 1]} : vector<8x32xbf16> to vector<8x8xbf16>
    %cst_64 = arith.constant dense<0.000000e+00> : vector<8x8xf32>
    %185 = tpu.matmul %183, %184, %cst_64 {dimension_numbers = #tpu.dot_dimension_numbers<[1], [1], [0], [0], [0, 0, 1, 0], [], []>} : vector<8x8xbf16>, vector<8x8xbf16>, vector<8x8xf32> -> vector<8x8xf32>
    %cst_65 = arith.constant dense<0xFF800000> : vector<8xf32>
    %186 = vector.multi_reduction <maximumf>, %185, %cst_65 [1] : vector<8x8xf32> to vector<8xf32>
    %187 = vector.shape_cast %186 : vector<8xf32> to vector<8x1xf32>
    %188 = vector.broadcast %187 : vector<8x1xf32> to vector<8x8xf32>
    %189 = arith.subf %185, %188 : vector<8x8xf32>
    %190 = math.exp %189 : vector<8x8xf32>
    %cst_66 = arith.constant dense<0.000000e+00> : vector<8xf32>
    %191 = vector.multi_reduction <add>, %190, %cst_66 [1] : vector<8x8xf32> to vector<8xf32>
    %192 = vector.shape_cast %191 : vector<8xf32> to vector<8x1xf32>
    %193 = tpu.reciprocal %192 : vector<8x1xf32> -> vector<8x1xf32>
    %194 = vector.broadcast %193 : vector<8x1xf32> to vector<8x8xf32>
    %195 = arith.mulf %190, %194 : vector<8x8xf32>
    %196 = arith.truncf %195 : vector<8x8xf32> to vector<8x8xbf16>
    %197 = vector.extract_strided_slice %182 {offsets = [0, 0], sizes = [8, 8], strides = [1, 1]} : vector<8x32xbf16> to vector<8x8xbf16>
    %cst_67 = arith.constant dense<0.000000e+00> : vector<8x8xf32>
    %198 = tpu.matmul %196, %197, %cst_67 {dimension_numbers = #tpu.dot_dimension_numbers<[1], [0], [0], [1], [0, 0, 1, 1], [], []>} : vector<8x8xbf16>, vector<8x8xbf16>, vector<8x8xf32> -> vector<8x8xf32>
    %199 = vector.extract_strided_slice %178 {offsets = [0, 8], sizes = [8, 8], strides = [1, 1]} : vector<8x32xbf16> to vector<8x8xbf16>
    %200 = vector.extract_strided_slice %180 {offsets = [0, 8], sizes = [8, 8], strides = [1, 1]} : vector<8x32xbf16> to vector<8x8xbf16>
    %cst_68 = arith.constant dense<0.000000e+00> : vector<8x8xf32>
    %201 = tpu.matmul %199, %200, %cst_68 {dimension_numbers = #tpu.dot_dimension_numbers<[1], [1], [0], [0], [0, 0, 1, 0], [], []>} : vector<8x8xbf16>, vector<8x8xbf16>, vector<8x8xf32> -> vector<8x8xf32>
    %cst_69 = arith.constant dense<0xFF800000> : vector<8xf32>
    %202 = vector.multi_reduction <maximumf>, %201, %cst_69 [1] : vector<8x8xf32> to vector<8xf32>
    %203 = vector.shape_cast %202 : vector<8xf32> to vector<8x1xf32>
    %204 = vector.broadcast %203 : vector<8x1xf32> to vector<8x8xf32>
    %205 = arith.subf %201, %204 : vector<8x8xf32>
    %206 = math.exp %205 : vector<8x8xf32>
    %cst_70 = arith.constant dense<0.000000e+00> : vector<8xf32>
    %207 = vector.multi_reduction <add>, %206, %cst_70 [1] : vector<8x8xf32> to vector<8xf32>
    %208 = vector.shape_cast %207 : vector<8xf32> to vector<8x1xf32>
    %209 = tpu.reciprocal %208 : vector<8x1xf32> -> vector<8x1xf32>
    %210 = vector.broadcast %209 : vector<8x1xf32> to vector<8x8xf32>
    %211 = arith.mulf %206, %210 : vector<8x8xf32>
    %212 = arith.truncf %211 : vector<8x8xf32> to vector<8x8xbf16>
    %213 = vector.extract_strided_slice %182 {offsets = [0, 8], sizes = [8, 8], strides = [1, 1]} : vector<8x32xbf16> to vector<8x8xbf16>
    %cst_71 = arith.constant dense<0.000000e+00> : vector<8x8xf32>
    %214 = tpu.matmul %212, %213, %cst_71 {dimension_numbers = #tpu.dot_dimension_numbers<[1], [0], [0], [1], [0, 0, 1, 1], [], []>} : vector<8x8xbf16>, vector<8x8xbf16>, vector<8x8xf32> -> vector<8x8xf32>
    %215 = vector.extract_strided_slice %178 {offsets = [0, 16], sizes = [8, 8], strides = [1, 1]} : vector<8x32xbf16> to vector<8x8xbf16>
    %216 = vector.extract_strided_slice %180 {offsets = [0, 16], sizes = [8, 8], strides = [1, 1]} : vector<8x32xbf16> to vector<8x8xbf16>
    %cst_72 = arith.constant dense<0.000000e+00> : vector<8x8xf32>
    %217 = tpu.matmul %215, %216, %cst_72 {dimension_numbers = #tpu.dot_dimension_numbers<[1], [1], [0], [0], [0, 0, 1, 0], [], []>} : vector<8x8xbf16>, vector<8x8xbf16>, vector<8x8xf32> -> vector<8x8xf32>
    %cst_73 = arith.constant dense<0xFF800000> : vector<8xf32>
    %218 = vector.multi_reduction <maximumf>, %217, %cst_73 [1] : vector<8x8xf32> to vector<8xf32>
    %219 = vector.shape_cast %218 : vector<8xf32> to vector<8x1xf32>
    %220 = vector.broadcast %219 : vector<8x1xf32> to vector<8x8xf32>
    %221 = arith.subf %217, %220 : vector<8x8xf32>
    %222 = math.exp %221 : vector<8x8xf32>
    %cst_74 = arith.constant dense<0.000000e+00> : vector<8xf32>
    %223 = vector.multi_reduction <add>, %222, %cst_74 [1] : vector<8x8xf32> to vector<8xf32>
    %224 = vector.shape_cast %223 : vector<8xf32> to vector<8x1xf32>
    %225 = tpu.reciprocal %224 : vector<8x1xf32> -> vector<8x1xf32>
    %226 = vector.broadcast %225 : vector<8x1xf32> to vector<8x8xf32>
    %227 = arith.mulf %222, %226 : vector<8x8xf32>
    %228 = arith.truncf %227 : vector<8x8xf32> to vector<8x8xbf16>
    %229 = vector.extract_strided_slice %182 {offsets = [0, 16], sizes = [8, 8], strides = [1, 1]} : vector<8x32xbf16> to vector<8x8xbf16>
    %cst_75 = arith.constant dense<0.000000e+00> : vector<8x8xf32>
    %230 = tpu.matmul %228, %229, %cst_75 {dimension_numbers = #tpu.dot_dimension_numbers<[1], [0], [0], [1], [0, 0, 1, 1], [], []>} : vector<8x8xbf16>, vector<8x8xbf16>, vector<8x8xf32> -> vector<8x8xf32>
    %231 = vector.extract_strided_slice %178 {offsets = [0, 24], sizes = [8, 8], strides = [1, 1]} : vector<8x32xbf16> to vector<8x8xbf16>
    %232 = vector.extract_strided_slice %180 {offsets = [0, 24], sizes = [8, 8], strides = [1, 1]} : vector<8x32xbf16> to vector<8x8xbf16>
    %cst_76 = arith.constant dense<0.000000e+00> : vector<8x8xf32>
    %233 = tpu.matmul %231, %232, %cst_76 {dimension_numbers = #tpu.dot_dimension_numbers<[1], [1], [0], [0], [0, 0, 1, 0], [], []>} : vector<8x8xbf16>, vector<8x8xbf16>, vector<8x8xf32> -> vector<8x8xf32>
    %cst_77 = arith.constant dense<0xFF800000> : vector<8xf32>
    %234 = vector.multi_reduction <maximumf>, %233, %cst_77 [1] : vector<8x8xf32> to vector<8xf32>
    %235 = vector.shape_cast %234 : vector<8xf32> to vector<8x1xf32>
    %236 = vector.broadcast %235 : vector<8x1xf32> to vector<8x8xf32>
    %237 = arith.subf %233, %236 : vector<8x8xf32>
    %238 = math.exp %237 : vector<8x8xf32>
    %cst_78 = arith.constant dense<0.000000e+00> : vector<8xf32>
    %239 = vector.multi_reduction <add>, %238, %cst_78 [1] : vector<8x8xf32> to vector<8xf32>
    %240 = vector.shape_cast %239 : vector<8xf32> to vector<8x1xf32>
    %241 = tpu.reciprocal %240 : vector<8x1xf32> -> vector<8x1xf32>
    %242 = vector.broadcast %241 : vector<8x1xf32> to vector<8x8xf32>
    %243 = arith.mulf %238, %242 : vector<8x8xf32>
    %244 = arith.truncf %243 : vector<8x8xf32> to vector<8x8xbf16>
    %245 = vector.extract_strided_slice %182 {offsets = [0, 24], sizes = [8, 8], strides = [1, 1]} : vector<8x32xbf16> to vector<8x8xbf16>
    %cst_79 = arith.constant dense<0.000000e+00> : vector<8x8xf32>
    %246 = tpu.matmul %244, %245, %cst_79 {dimension_numbers = #tpu.dot_dimension_numbers<[1], [0], [0], [1], [0, 0, 1, 1], [], []>} : vector<8x8xbf16>, vector<8x8xbf16>, vector<8x8xf32> -> vector<8x8xf32>
    %247 = tpu.concatenate %198, %214, %230, %246 in 1 : vector<8x8xf32>, vector<8x8xf32>, vector<8x8xf32>, vector<8x8xf32> -> vector<8x32xf32>
    %248 = arith.truncf %247 : vector<8x32xf32> to vector<8x32xbf16>
    %c0_80 = arith.constant 0 : index
    %c0_81 = arith.constant 0 : index
    %249 = vector.load %arg14[%c0_80, %c0_81] : memref<32x32xbf16, #tpu.memory_space<vmem>>, vector<32x32xbf16>
    %cst_82 = arith.constant dense<0.000000e+00> : vector<8x32xf32>
    %250 = tpu.matmul %248, %249, %cst_82 {dimension_numbers = #tpu.dot_dimension_numbers<[1], [0], [0], [1], [0, 0, 1, 1], [], []>} : vector<8x32xbf16>, vector<32x32xbf16>, vector<8x32xf32> -> vector<8x32xf32>
    %c0_83 = arith.constant 0 : index
    %c0_84 = arith.constant 0 : index
    %251 = vector.load %arg15[%c0_83, %c0_84] : memref<1x32xf32, #tpu.memory_space<vmem>>, vector<1x32xf32>
    %252 = vector.broadcast %251 : vector<1x32xf32> to vector<8x32xf32>
    %253 = arith.addf %250, %252 : vector<8x32xf32>
    %254 = arith.addf %144, %253 : vector<8x32xf32>
    %c0_85 = arith.constant 0 : index
    %c0_86 = arith.constant 0 : index
    %255 = vector.load %arg6[%c0_85, %c0_86] : memref<1x32xf32, #tpu.memory_space<vmem>>, vector<1x32xf32>
    %c0_87 = arith.constant 0 : index
    %c0_88 = arith.constant 0 : index
    %256 = vector.load %arg7[%c0_87, %c0_88] : memref<1x32xf32, #tpu.memory_space<vmem>>, vector<1x32xf32>
    %cst_89 = arith.constant dense<0.000000e+00> : vector<8xf32>
    %257 = vector.multi_reduction <add>, %254, %cst_89 [1] : vector<8x32xf32> to vector<8xf32>
    %258 = vector.shape_cast %257 : vector<8xf32> to vector<8x1xf32>
    %cst_90 = arith.constant 3.200000e+01 : f32
    %259 = vector.broadcast %cst_90 : f32 to vector<8x1xf32>
    %260 = arith.divf %258, %259 : vector<8x1xf32>
    %261 = vector.broadcast %260 : vector<8x1xf32> to vector<8x32xf32>
    %262 = arith.subf %254, %261 : vector<8x32xf32>
    %263 = arith.mulf %262, %262 : vector<8x32xf32>
    %cst_91 = arith.constant dense<0.000000e+00> : vector<8xf32>
    %264 = vector.multi_reduction <add>, %263, %cst_91 [1] : vector<8x32xf32> to vector<8xf32>
    %265 = vector.shape_cast %264 : vector<8xf32> to vector<8x1xf32>
    %cst_92 = arith.constant 3.200000e+01 : f32
    %266 = vector.broadcast %cst_92 : f32 to vector<8x1xf32>
    %267 = arith.divf %265, %266 : vector<8x1xf32>
    %268 = vector.broadcast %260 : vector<8x1xf32> to vector<8x32xf32>
    %269 = arith.subf %254, %268 : vector<8x32xf32>
    %cst_93 = arith.constant 9.99999974E-6 : f32
    %270 = vector.broadcast %cst_93 : f32 to vector<8x1xf32>
    %271 = arith.addf %267, %270 : vector<8x1xf32>
    %272 = math.rsqrt %271 : vector<8x1xf32>
    %273 = vector.broadcast %272 : vector<8x1xf32> to vector<8x32xf32>
    %274 = arith.mulf %269, %273 : vector<8x32xf32>
    %275 = vector.broadcast %255 : vector<1x32xf32> to vector<8x32xf32>
    %276 = arith.mulf %274, %275 : vector<8x32xf32>
    %277 = vector.broadcast %256 : vector<1x32xf32> to vector<8x32xf32>
    %278 = arith.addf %276, %277 : vector<8x32xf32>
    %279 = arith.truncf %278 : vector<8x32xf32> to vector<8x32xbf16>
    %c0_94 = arith.constant 0 : index
    %c0_95 = arith.constant 0 : index
    %280 = vector.load %arg16[%c0_94, %c0_95] : memref<32x128xbf16, #tpu.memory_space<vmem>>, vector<32x128xbf16>
    %cst_96 = arith.constant dense<0.000000e+00> : vector<8x128xf32>
    %281 = tpu.matmul %279, %280, %cst_96 {dimension_numbers = #tpu.dot_dimension_numbers<[1], [0], [0], [1], [0, 0, 1, 1], [], []>} : vector<8x32xbf16>, vector<32x128xbf16>, vector<8x128xf32> -> vector<8x128xf32>
    %c0_97 = arith.constant 0 : index
    %c0_98 = arith.constant 0 : index
    %282 = vector.load %arg17[%c0_97, %c0_98] : memref<1x128xf32, #tpu.memory_space<vmem>>, vector<1x128xf32>
    %283 = vector.broadcast %282 : vector<1x128xf32> to vector<8x128xf32>
    %284 = arith.addf %281, %283 : vector<8x128xf32>
    %cst_99 = arith.constant 0.000000e+00 : f32
    %285 = vector.broadcast %cst_99 : f32 to vector<8x128xf32>
    %286 = arith.maximumf %284, %285 : vector<8x128xf32>
    %287 = arith.truncf %286 : vector<8x128xf32> to vector<8x128xbf16>
    %c0_100 = arith.constant 0 : index
    %c0_101 = arith.constant 0 : index
    %288 = vector.load %arg18[%c0_100, %c0_101] : memref<128x32xbf16, #tpu.memory_space<vmem>>, vector<128x32xbf16>
    %cst_102 = arith.constant dense<0.000000e+00> : vector<8x32xf32>
    %289 = tpu.matmul %287, %288, %cst_102 {dimension_numbers = #tpu.dot_dimension_numbers<[1], [0], [0], [1], [0, 0, 1, 1], [], []>} : vector<8x128xbf16>, vector<128x32xbf16>, vector<8x32xf32> -> vector<8x32xf32>
    %c0_103 = arith.constant 0 : index
    %c0_104 = arith.constant 0 : index
    %290 = vector.load %arg19[%c0_103, %c0_104] : memref<1x32xf32, #tpu.memory_space<vmem>>, vector<1x32xf32>
    %291 = vector.broadcast %290 : vector<1x32xf32> to vector<8x32xf32>
    %292 = arith.addf %289, %291 : vector<8x32xf32>
    %293 = arith.addf %254, %292 : vector<8x32xf32>
    %c0_105 = arith.constant 0 : index
    %c0_106 = arith.constant 0 : index
    %c0_107 = arith.constant 0 : index
    %294 = vector.load %arg20[%c0_105, %c0_106, %c0_107] : memref<1x8x32xf32, #tpu.memory_space<vmem>>, vector<1x8x32xf32>
    %295 = vector.shape_cast %294 : vector<1x8x32xf32> to vector<8x32xf32>
    %296 = vector.shape_cast %293 : vector<8x32xf32> to vector<1x8x32xf32>
    tpu.vector_store %arg20[%c0_105, %c0_106, %c0_107], %296 {strides = array<i32>} : memref<1x8x32xf32, #tpu.memory_space<vmem>>, vector<1x8x32xf32>,
    return
  }
  func.func @transform_0(%arg0: i32) -> (i32, i32, i32) {
    %c0_i32 = arith.constant 0 : i32
    %c0_i32_0 = arith.constant 0 : i32
    %c0_i32_1 = arith.constant 0 : i32
    return %arg0, %c0_i32, %c0_i32_0 : i32, i32, i32
  }
  func.func @transform_1(%arg0: i32) -> (i32, i32) {
    %c0_i32 = arith.constant 0 : i32
    %c0_i32_0 = arith.constant 0 : i32
    %c0_i32_1 = arith.constant 0 : i32
    return %c0_i32, %c0_i32_0 : i32, i32
  }
  func.func @transform_2(%arg0: i32) -> (i32, i32) {
    %c0_i32 = arith.constant 0 : i32
    %c0_i32_0 = arith.constant 0 : i32
    %c0_i32_1 = arith.constant 0 : i32
    return %c0_i32, %c0_i32_0 : i32, i32
  }
  func.func @transform_3(%arg0: i32) -> (i32, i32) {
    %c0_i32 = arith.constant 0 : i32
    %c0_i32_0 = arith.constant 0 : i32
    %c0_i32_1 = arith.constant 0 : i32
    return %c0_i32, %c0_i32_0 : i32, i32
  }
  func.func @transform_4(%arg0: i32) -> (i32, i32) {
    %c0_i32 = arith.constant 0 : i32
    %c0_i32_0 = arith.constant 0 : i32
    %c0_i32_1 = arith.constant 0 : i32
    return %c0_i32, %c0_i32_0 : i32, i32
  }
  func.func @transform_5(%arg0: i32) -> (i32, i32) {
    %c0_i32 = arith.constant 0 : i32
    %c0_i32_0 = arith.constant 0 : i32
    %c0_i32_1 = arith.constant 0 : i32
    return %c0_i32, %c0_i32_0 : i32, i32
  }
  func.func @transform_6(%arg0: i32) -> (i32, i32) {
    %c0_i32 = arith.constant 0 : i32
    %c0_i32_0 = arith.constant 0 : i32
    %c0_i32_1 = arith.constant 0 : i32
    return %c0_i32, %c0_i32_0 : i32, i32
  }
  func.func @transform_7(%arg0: i32) -> (i32, i32) {
    %c0_i32 = arith.constant 0 : i32
    %c0_i32_0 = arith.constant 0 : i32
    %c0_i32_1 = arith.constant 0 : i32
    return %c0_i32, %c0_i32_0 : i32, i32
  }
  func.func @transform_8(%arg0: i32) -> (i32, i32) {
    %c0_i32 = arith.constant 0 : i32
    %c0_i32_0 = arith.constant 0 : i32
    %c0_i32_1 = arith.constant 0 : i32
    return %c0_i32, %c0_i32_0 : i32, i32
  }
  func.func @transform_9(%arg0: i32) -> (i32, i32) {
    %c0_i32 = arith.constant 0 : i32
    %c0_i32_0 = arith.constant 0 : i32
    %c0_i32_1 = arith.constant 0 : i32
    return %c0_i32, %c0_i32_0 : i32, i32
  }
  func.func @transform_10(%arg0: i32) -> (i32, i32) {
    %c0_i32 = arith.constant 0 : i32
    %c0_i32_0 = arith.constant 0 : i32
    %c0_i32_1 = arith.constant 0 : i32
    return %c0_i32, %c0_i32_0 : i32, i32
  }
  func.func @transform_11(%arg0: i32) -> (i32, i32) {
    %c0_i32 = arith.constant 0 : i32
    %c0_i32_0 = arith.constant 0 : i32
    %c0_i32_1 = arith.constant 0 : i32
    return %c0_i32, %c0_i32_0 : i32, i32
  }
  func.func @transform_12(%arg0: i32) -> (i32, i32) {
    %c0_i32 = arith.constant 0 : i32
    %c0_i32_0 = arith.constant 0 : i32
    %c0_i32_1 = arith.constant 0 : i32
    return %c0_i32, %c0_i32_0 : i32, i32
  }
  func.func @transform_13(%arg0: i32) -> (i32, i32) {
    %c0_i32 = arith.constant 0 : i32
    %c0_i32_0 = arith.constant 0 : i32
    %c0_i32_1 = arith.constant 0 : i32
    return %c0_i32, %c0_i32_0 : i32, i32
  }
  func.func @transform_14(%arg0: i32) -> (i32, i32) {
    %c0_i32 = arith.constant 0 : i32
    %c0_i32_0 = arith.constant 0 : i32
    %c0_i32_1 = arith.constant 0 : i32
    return %c0_i32, %c0_i32_0 : i32, i32
  }
  func.func @transform_15(%arg0: i32) -> (i32, i32) {
    %c0_i32 = arith.constant 0 : i32
    %c0_i32_0 = arith.constant 0 : i32
    %c0_i32_1 = arith.constant 0 : i32
    return %c0_i32, %c0_i32_0 : i32, i32
  }
  func.func @transform_16(%arg0: i32) -> (i32, i32) {
    %c0_i32 = arith.constant 0 : i32
    %c0_i32_0 = arith.constant 0 : i32
    %c0_i32_1 = arith.constant 0 : i32
    return %c0_i32, %c0_i32_0 : i32, i32
  }
  func.func @transform_17(%arg0: i32) -> (i32, i32) {
    %c0_i32 = arith.constant 0 : i32
    %c0_i32_0 = arith.constant 0 : i32
    %c0_i32_1 = arith.constant 0 : i32
    return %c0_i32, %c0_i32_0 : i32, i32
  }
  func.func @transform_18(%arg0: i32) -> (i32, i32) {
    %c0_i32 = arith.constant 0 : i32
    %c0_i32_0 = arith.constant 0 : i32
    %c0_i32_1 = arith.constant 0 : i32
    return %c0_i32, %c0_i32_0 : i32, i32
  }
  func.func @transform_19(%arg0: i32) -> (i32, i32, i32) {
    %c0_i32 = arith.constant 0 : i32
    %c0_i32_0 = arith.constant 0 : i32
    %c0_i32_1 = arith.constant 0 : i32
    return %arg0, %c0_i32, %c0_i32_0 : i32, i32, i32
  }
  func.func @transform_20(%arg0: i32) -> (i32, i32, i32, i32) {
    %c0_i32 = arith.constant 0 : i32
    %c0_i32_0 = arith.constant 0 : i32
    %c0_i32_1 = arith.constant 0 : i32
    %c0_i32_2 = arith.constant 0 : i32
    return %arg0, %c0_i32, %c0_i32_0, %c0_i32_1 : i32, i32, i32, i32
  }
}

</mosaic_0001>

<bundles_post_ra>
// kernel: tpu_custom_call.1
= control target key start
LH: loop header
LB: loop body
LE: loop exit
PB: predicated region body
PF: predicated region fallthrough
CT: control target
= control target key end

     0   :  { %s3497_s0 = inlined_call_operand.vmem [shape: f32[2,8,32], index: 0, kind: input, shape index: {}]   ;;  %s3498_s1 = inlined_call_operand.hbm [shape: f32[1,32], index: 1, kind: input, shape index: {}]   ;;  %s3499_s2 = inlined_call_operand.hbm [shape: f32[1,32], index: 2, kind: input, shape index: {}]   ;;  %s3500_s3 = inlined_call_operand.hbm [shape: f32[1,32], index: 3, kind: input, shape index: {}]   ;;  %s3501_s4 = inlined_call_operand.hbm [shape: f32[1,32], index: 4, kind: input, shape index: {}]   ;;  %s3502_s5 = inlined_call_operand.hbm [shape: f32[1,32], index: 5, kind: input, shape index: {}]   ;;  %s3503_s6 = inlined_call_operand.hbm [shape: f32[1,32], index: 6, kind: input, shape index: {}]   ;;  %s3504_s7 = inlined_call_operand.vmem [shape: bf16[32,96], index: 7, kind: input, shape index: {}]   ;;  %s3505_s8 = inlined_call_operand.hbm [shape: f32[1,96], index: 8, kind: input, shape index: {}]   ;;  %s3506_s9 = inlined_call_operand.vmem [shape: bf16[32,32], index: 9, kind: input, shape index: {}]   ;;  %s3507_s10 = inlined_call_operand.hbm [shape: f32[1,32], index: 10, kind: input, shape index: {}]   ;;  %s3508_s11 = inlined_call_operand.vmem [shape: bf16[32,96], index: 11, kind: input, shape index: {}]   ;;  %s3509_s12 = inlined_call_operand.hbm [shape: f32[1,96], index: 12, kind: input, shape index: {}]   ;;  %s3510_s13 = inlined_call_operand.vmem [shape: bf16[32,32], index: 13, kind: input, shape index: {}]   ;;  %s3511_s14 = inlined_call_operand.hbm [shape: f32[1,32], index: 14, kind: input, shape index: {}]   ;;  %s3512_s15 = inlined_call_operand.hbm [shape: bf16[32,128], index: 15, kind: input, shape index: {}]   ;;  %s3513_s16 = inlined_call_operand.hbm [shape: f32[1,128], index: 16, kind: input, shape index: {}]   ;;  %s3514_s17 = inlined_call_operand.vmem [shape: bf16[128,32], index: 17, kind: input, shape index: {}]   ;;  %s3515_s18 = inlined_call_operand.vmem [shape: f32[1,32], index: 18, kind: input, shape index: {}]   ;;  %s3516_s19 = inlined_call_operand.hbm [shape: f32[2,8,32], index: 19, kind: output, shape index: {0}]   ;;  %s3517_s20 = inlined_call_operand.hbm [shape: f32[2,4,8,8], index: 20, kind: output, shape index: {1}]  }
   0x1   :  { %3529 = sst [smem:[#allocation40_spill]] %s3497_s0 }
   0x2   :  { %3530 = sst [smem:[#allocation41_spill]] %s3498_s1 }
   0x3   :  { %3531 = sst [smem:[#allocation42_spill]] %s3499_s2 }
   0x4   :  { %3532 = sst [smem:[#allocation43_spill]] %s3500_s3 }
   0x5   :  { %3533 = sst [smem:[#allocation44_spill]] %s3501_s4 }
   0x6   :  { %3534 = sst [smem:[#allocation45_spill]] %s3502_s5 }
   0x7   :  { %3535 = sst [smem:[#allocation46_spill]] %s3503_s6 }
   0x8   :  { %3536 = sst [smem:[#allocation47_spill]] %s3504_s7 }
   0x9   :  { %3537 = sst [smem:[#allocation48_spill]] %s3507_s10 }
   0xa   :  { %3538 = sst [smem:[#allocation49_spill]] %s3515_s18 }
   0xb   :  { %3539 = sst [smem:[#allocation50_spill]] %s3516_s19 }
   0xc   :  { %3540 = sst [smem:[#allocation51_spill]] %s3517_s20 }
   0xd   :  { %26 = vsyncpa [#allocation3], 0 }
   0xe   :  { %27 = vsyncpa [#allocation6], 0 }
   0xf   :  { %28 = vsyncpa [#allocation9], 0 }
  0x10   :  { %29 = vsyncpa [#allocation12], 0 }
  0x11   :  { %30 = vsyncpa [#allocation15], 0 }
  0x12   :  { %31 = vsyncpa [#allocation18], 0 }
  0x13   :  { %32 = vsyncpa [#allocation21], 0 }
  0x14   :  { %33 = vsyncpa [#allocation4], 0 }
  0x15   :  { %35 = vsyncpa [#allocation4 + $0x1], 0 }
  0x16   :  { %36 = vsyncpa [#allocation24], 0 }
  0x17   :  { %38 = vsyncpa [#allocation24 + $0x1], 0  ;;  %s3061_s1 = smov 0   ;;  %s3063_s22 = smov 0  }
  0x18   :  { %s3065_s23 = smov 0   ;;  %s3067_s24 = smov 0  }
  0x19 LB: > { %3541 = sst [smem:[#allocation34_spill]] %s2912_s1  ;;  %s3082_s2 = sadd.s32 4294967295, %s2924_s24   ;;  %s2924_s24 = sphi %s3067_s24, %s3569_s24   ;;  %s2920_s23 = sphi %s3065_s23, %s3571_s23   ;;  %s2916_s22 = sphi %s3063_s22, %s3573_s22   ;;  %s2912_s1 = sphi %s3061_s1, %s3572_s1  }
  0x1a   : > { %3542 = sst [smem:[#allocation35_spill]] %s2920_s23  ;;  %s2057_s25 = sadd.s32 4294967294, %s2924_s24  }
  0x1b   : > { %3543 = sst [smem:[#allocation36_spill]] %s2924_s24  ;;  %s3086_s3 = sadd.s32 1, %s2924_s24  }
  0x1c   : > { %3544 = sst [smem:[#allocation37_spill]] %s3086_s3  ;;  %s455_s26 = sadd.s32 1, %s2920_s23 }
  0x1d   : > { %s452_s27 = ssub.s32 %s2924_s24, %s3086_s3  ;;  %p465_p0 = scmp.ne.s32.totalorder %s2920_s23, %s2916_s22 }
  0x1e   : > { %p453_p1 = scmp.eq.s32.totalorder %s452_s27, 0  ;;  %p466_p2 = scmp.eq.s32.totalorder %s3082_s2, 1 }
  0x1f   : > { %p471_p3 = scmp.ne.s32.totalorder %s2916_s22, %s2912_s1  ;;  %p472_p4 = scmp.eq.s32.totalorder %s2057_s25, 1 }
  0x20   : > { %s3097_s28 = scalar_select %p453_p1, %s2920_s23, %s455_s26  }
  0x21   : > { %p3099_p5 = por %p466_p2, %p465_p0  ;;  %p3103_p6 = por %p472_p4, %p471_p3 }
  0x22   : > { %3545 = sst [smem:[#allocation38_spill]] %s3097_s28  ;;  %p2058_p7 = scmp.ge.s32.totalorder %s2924_s24, 1 }
  0x23   : > { %s3547_s29 = scalar_select %p3103_p6, 1, 0 }
  0x24   : > { %p505_p8 = scmp.lt.s32.totalorder %s2924_s24, 3  ;;  %p2303_p9 = scmp.eq.s32.totalorder %s3082_s2, 0 }
  0x25   : > { %3548 = sst [smem:[#allocation39_spill]] %s3547_s29  ;;  %s2926_s27 = smov [#allocation5]  }
  0x26   : > { %p3110_p10 = pnand %p2058_p7, %p505_p8  ;;  %s3550_s25 = sld [smem:[#allocation42_spill]] }
  0x27   : > { %s531_s28 = sshll.u32 %s2926_s27, 4  ;;  %s3551_s29 = sld [smem:[#allocation44_spill]]  ;;  %s532_s28 = int_to_ptr.vmem [resolvable:$true] %s531_s28 }
  0x28   : > { %p2259_p11 = pneg %p3110_p10  ;;  %s3553_s6 = sld [smem:[#allocation46_spill]] }
  0x29   : > { %s2927_s19 = smov [#allocation8]   ;;  %s3554_s10 = sld [smem:[#allocation48_spill]] }
  0x2a   : > { %p3124_p12 = pnand %p2303_p9, %p2259_p11  ;;  %s555_s27 = sshll.u32 %s2927_s19, 4  ;;  %s556_s27 = int_to_ptr.vmem [resolvable:$true] %s555_s27 }
  0x2b   : > { %s2928_s18 = smov [#allocation11]   ;;  %s2929_s0 = smov [#allocation14]  }
  0x2c   : > { %s529_s26 = sshll.u32 %s3550_s25, 4  ;;  %s579_s20 = sshll.u32 %s2928_s18, 4  ;;  %s530_s26 = int_to_ptr.hbm [resolvable:$true] %s529_s26  ;;  %s580_s20 = int_to_ptr.vmem [resolvable:$true] %s579_s20 }
  0x2d   : > { %s553_s1 = sshll.u32 %s3551_s29, 4  ;;  %s609_s19 = sshll.u32 %s2929_s0, 4  ;;  %s554_s1 = int_to_ptr.hbm [resolvable:$true] %s553_s1  ;;  %s610_s19 = int_to_ptr.vmem [resolvable:$true] %s609_s19 }
  0x2e   : > { %s577_s25 = sshll.u32 %s3553_s6, 4  ;;  %s2930_s18 = smov [#allocation17]   ;;  %s578_s25 = int_to_ptr.hbm [resolvable:$true] %s577_s25 }
  0x2f   : > { %2265 = dma.hbm_to_vmem [thread:$0]  (!%p3124_p12), %s530_s26, 16, %s532_s28, [#allocation6]  }
  0x30   : > { %2271 = dma.hbm_to_vmem [thread:$0]  (!%p3124_p12), %s554_s1, 16, %s556_s27, [#allocation9]  }
  0x31   : > { %s607_s29 = sshll.u32 %s3554_s10, 4  ;;  %s637_s28 = sshll.u32 %s3511_s14, 4  ;;  %s608_s29 = int_to_ptr.hbm [resolvable:$true] %s607_s29  ;;  %s638_s28 = int_to_ptr.hbm [resolvable:$true] %s637_s28 }
  0x32   : > { %2277 = dma.hbm_to_vmem [thread:$0]  (!%p3124_p12), %s578_s25, 16, %s580_s20, [#allocation12]  }
  0x33   : > { %2283 = dma.hbm_to_vmem [thread:$0]  (!%p3124_p12), %s608_s29, 16, %s610_s19, [#allocation15]  }
  0x34   : > { %s3555_s27 = sld [smem:[#allocation41_spill]]  ;;  %s639_s3 = sshll.u32 %s2930_s18, 4  ;;  %s640_s3 = int_to_ptr.vmem [resolvable:$true] %s639_s3 }
  0x35   : > { %2289 = dma.hbm_to_vmem [thread:$0]  (!%p3124_p12), %s638_s28, 16, %s640_s3, [#allocation18]  }
  0x36   : > { %s2931_s20 = smov [#allocation2]   ;;  %s3556_s21 = sld [smem:[#allocation43_spill]] }
  0x37   : > { %s519_s25 = sshll.u32 %s2931_s20, 4  ;;  %s3557_s5 = sld [smem:[#allocation45_spill]]  ;;  %s520_s25 = int_to_ptr.vmem [resolvable:$true] %s519_s25 }
  0x38   : > { %s2932_s26 = smov [#allocation7]   ;;  %s2933_s28 = smov [#allocation10]  }
  0x39   : > { %s567_s18 = sshll.u32 %s2933_s28, 4  ;;  %s592_s6 = sshll.u32 %s3505_s8, 4  ;;  %s568_s18 = int_to_ptr.vmem [resolvable:$true] %s567_s18  ;;  %s593_s6 = int_to_ptr.hbm [resolvable:$true] %s592_s6 }
  0x3a   : > { %s517_s23 = sshll.u32 %s3555_s27, 4  ;;  %s543_s27 = sshll.u32 %s2932_s26, 4  ;;  %s518_s23 = int_to_ptr.hbm [resolvable:$true] %s517_s23  ;;  %s544_s27 = int_to_ptr.vmem [resolvable:$true] %s543_s27 }
  0x3b   : > { %2262 = dma.hbm_to_vmem [thread:$0]  (!%p3124_p12), %s518_s23, 16, %s520_s25, [#allocation3]  }
  0x3c   : > { %s541_s10 = sshll.u32 %s3556_s21, 4  ;;  %s622_s0 = sshll.u32 %s3509_s12, 4  ;;  %s542_s10 = int_to_ptr.hbm [resolvable:$true] %s541_s10  ;;  %s623_s0 = int_to_ptr.hbm [resolvable:$true] %s622_s0 }
  0x3d   : > { %s565_s1 = sshll.u32 %s3557_s5, 4  ;;  %s2934_s21 = smov [#allocation13]   ;;  %s566_s1 = int_to_ptr.hbm [resolvable:$true] %s565_s1 }
  0x3e   : > { %2268 = dma.hbm_to_vmem [thread:$0]  (!%p3124_p12), %s542_s10, 16, %s544_s27, [#allocation6]  }
  0x3f   : > { %2274 = dma.hbm_to_vmem [thread:$0]  (!%p3124_p12), %s566_s1, 16, %s568_s18, [#allocation9]  }
  0x40   : > { %s594_s29 = sshll.u32 %s2934_s21, 4  ;;  %s2935_s10 = smov [#allocation16]   ;;  %s595_s29 = int_to_ptr.vmem [resolvable:$true] %s594_s29 }
  0x41   : > { %2280 = dma.hbm_to_vmem [thread:$0]  (!%p3124_p12), %s593_s6, 16, %s595_s29, [#allocation12]  }
  0x42   : > { %s624_s19 = sshll.u32 %s2935_s10, 4  ;;  %s648_s28 = sshll.u32 %s3512_s15, 4  ;;  %s625_s19 = int_to_ptr.vmem [resolvable:$true] %s624_s19  ;;  %s649_s28 = int_to_ptr.hbm [resolvable:$true] %s648_s28 }
  0x43   : > { %2286 = dma.hbm_to_vmem [thread:$0]  (!%p3124_p12), %s623_s0, 16, %s625_s19, [#allocation15]  }
  0x44   : > { %s2936_s1 = smov [#allocation19]   ;;  %s663_s23 = sshll.u32 %s3513_s16, 4  ;;  %s664_s23 = int_to_ptr.hbm [resolvable:$true] %s663_s23 }
  0x45   : > { %s650_s18 = sshll.u32 %s2936_s1, 4  ;;  %s2937_s25 = smov 64   ;;  %s651_s18 = int_to_ptr.vmem [resolvable:$true] %s650_s18 }
  0x46   : > { %s2938_s6 = smov 4   ;;  %s2939_s21 = smov [#allocation20]  }
  0x47   : > { %2292 = dma.hbm_to_vmem [thread:$0]  (!%p3124_p12), %s649_s28, 256, %s651_s18, [#allocation18], %s2937_s25, %s2937_s25, %s2938_s6  }
  0x48   : > { %s665_s29 = sshll.u32 %s2939_s21, 4  ;;  %691 = sbr.rel (%p3110_p10) target bundleno = 3275 (0xccb), region = 96  ;;  %s666_s29 = int_to_ptr.vmem [resolvable:$true] %s665_s29 }
  0x49   : > { %2295 = dma.hbm_to_vmem [thread:$0]  (!%p3124_p12), %s664_s23, 16, %s666_s29, [#allocation21]  }
  0x4d   : > { %2875 = dma.done.wait (%p2303_p9), [#allocation3], 16  }
  0x4e   : > { %2877 = vsyncadd (%p2303_p9), [#allocation3], 4294967280 }
  0x4f   : > { %2879 = dma.done.wait (%p2303_p9), [#allocation6], 32  }
  0x50   : > { %2881 = vsyncadd (%p2303_p9), [#allocation6], 4294967264 }
  0x51   : > { %2883 = dma.done.wait (%p2303_p9), [#allocation9], 32  }
  0x52   : > { %2885 = vsyncadd (%p2303_p9), [#allocation9], 4294967264 }
  0x53   : > { %2887 = dma.done.wait (%p2303_p9), [#allocation12], 32  }
  0x54   : > { %2889 = vsyncadd (%p2303_p9), [#allocation12], 4294967264 }
  0x55   : > { %2891 = dma.done.wait (%p2303_p9), [#allocation15], 32  }
  0x56   : > { %2893 = vsyncadd (%p2303_p9), [#allocation15], 4294967264 }
  0x57   : > { %2895 = dma.done.wait (%p2303_p9), [#allocation18], 272  }
  0x58   : > { %2897 = vsyncadd (%p2303_p9), [#allocation18], 4294967024 }
  0x59   : > { %2899 = dma.done.wait (%p2303_p9), [#allocation21], 16  }
  0x5a   : > { %2901 = vsyncadd (%p2303_p9), [#allocation21], 4294967280  ;;  %p809_p13 = scmp.lt.s32.totalorder %s3082_s2, 1  ;;  %s3558_s19 = sld [smem:[#allocation40_spill]]  ;;  %vm824_vm0 = vcmask 261120   ;;  %v2940_v2 = vmov 32.0   ;;  %v815_v54 = vlaneseq }
  0x5b   : > { %2402 = vrcp.f32 %v2940_v2  ;;  %s3559_s7 = sld [smem:[#allocation47_spill]]  ;;  %v2390_v25 = vld [vmem:[#allocation2] ss:$0 sm:$0xff]  ;;  %v2391_v28 = vld [vmem:[#allocation5] ss:$0 sm:$0xff]  ;;  %s2941_s3 = smov 96  }
  0x5c   : > { %s810_s24 = scalar_select %p809_p13, %s3082_s2, 1  ;;  %v2392_v32 = vld [vmem:[#allocation13] ss:$0 sm:$0xff]  ;;  %vm908_vm5 = vcmask 64512   ;;  %v816_v55 = vshrl.u32 %v815_v54, 7  ;;  %v818_v56 = vand.u32 127, %v815_v54 }
  0x5d   : > { %s2942_s20 = smov 104   ;;  %s2943_s23 = smov 120   ;;  %vm959_vm11 = vcmask 1043456  }
  0x5e   : > { %s2087_s30 = sshll.u32 %s810_s24, 3  ;;  %s2944_s25 = smov 88   ;;  %v820_v57 = vsub.s32 %v818_v56, %v816_v55  ;;  %vm819_vm6 = vcmp.le.s32.totalorder %v818_v56, %v816_v55 }
  0x5f   : > { %s2945_s6 = smov 72   ;;  %s2946_s21 = smov 80  }
  0x60   : > { %s812_s26 = scalar_lea.vmem %s3558_s19, %s2087_s30  ;;  %s2947_s29 = smov 112   ;;  %v821_v58 = vcvt.s32.f32 %v820_v57 }
  0x61   : > { %v3217_v0 = vld [vmem:[%s812_s26] sm:$0xff]  ;;  %v2403_v3 = vpop.eup %2402  ;;  %v2189_v14 = vld [vmem:[%s3559_s7 + $0x8] sm:$0xff]  ;;  %s2948_s24 = smov 64   ;;  %s3527_s30 = smov 48  }
  0x62   : > { %v825_v1 = vsel %vm824_vm0, %v3217_v0, 0.0  ;;  %v829_v4 = vmul.f32 32.0, %v2403_v3  ;;  %vm833_vm1 = vweird.f32 %v2403_v3  ;;  %892 = vmatpush.bf16.msra.mxu1 %v2189_v14  ;;  %v2188_v15 = vld [vmem:[%s3559_s7] sm:$0xff]  ;;  %v902_v59 = vmul.f32 0.5, %v821_v58  ;;  %s3526_s0 = smov 56   ;;  %s3528_s10 = smov 40  }
  0x63   : > { %826 = vadd.xlane.f32.xlu0 %v825_v1  ;;  %v976_v2 = vmul.f32 0.25, %v821_v58  ;;  %s3285_s19 = sand.u32 1, %s2916_s22   ;;  %s2952_s28 = smov 16  }
  0x64   : > { %v830_v5 = vsub.f32 1.0, %v829_v4  ;;  %s2086_s26 = sshll.u32 %s3285_s19, 5  ;;  %s2953_s1 = smov 8  }
  0x65   : > { %s3288_s27 = scalar_lea.vmem [#allocation23], %s2086_s26  ;;  %s2954_s18 = smov 24  }
  0x66   : > { %v831_v6 = vmul.f32 %v2403_v3, %v830_v5  ;;  %893 = vmatpush.bf16.msra.mxu1 %v2188_v15  ;;  %v1050_v5 = vmul.f32 0.125, %v821_v58  ;;  %v1121_v15 = vmul.f32 0.0625, %v821_v58  ;;  %s3563_s26 = sld [smem:[#allocation51_spill]] }
  0x68   : > { %v832_v7 = vadd.f32 %v2403_v3, %v831_v6 }
  0x6a   : > { %v3221_v8 = vsel %vm833_vm1, %v2403_v3, %v832_v7 }
  0xd6   : > { %v827_v9 = vpop.xlane.xlu0 %826 }
  0xd7   : > { %v835_v10 = vmul.f32 %v3221_v8, %v827_v9 }
  0xd9   : > { %v836_v11 = vsub.f32 %v3217_v0, %v835_v10 }
  0xdb   : > { %v837_v12 = vmul.f32 %v836_v11, %v836_v11 }
  0xdd   : > { %v838_v13 = vsel %vm824_vm0, %v837_v12, 0.0 }
  0xde   : > { %839 = vadd.xlane.f32.xlu0 %v838_v13 }
 0x151   : > { %v840_v16 = vpop.xlane.xlu0 %839 }
 0x152   : > { %v841_v17 = vmul.f32 %v840_v16, %v3221_v8 }
 0x154   : > { %v842_v18 = vadd.f32 1e-05, %v841_v17 }
 0x156   : > { %2404 = vrsqrt.f32 %v842_v18  ;;  %vm849_vm3 = vweird.f32 %v842_v18 }
 0x15c   : > { %v2405_v19 = vpop.eup %2404 }
 0x15d   : > { %v844_v20 = vmul.f32 %v2405_v19, %v842_v18  ;;  %vm850_vm2 = vweird.f32 %v2405_v19 }
 0x15e   : > { %vm851_vm4 = vmor %vm849_vm3, %vm850_vm2 }
 0x15f   : > { %v845_v21 = vmul.f32 %v2405_v19, %v844_v20 }
 0x161   : > { %v846_v22 = vmul.f32 0.5, %v845_v21 }
 0x163   : > { %v847_v23 = vsub.f32 1.5, %v846_v22 }
 0x165   : > { %v848_v24 = vmul.f32 %v2405_v19, %v847_v23 }
 0x167   : > { %v852_v26 = vsel %vm851_vm4, %v2405_v19, %v848_v24 }
 0x168   : > { %v853_v27 = vmul.f32 %v852_v26, %v836_v11 }
 0x16a   : > { %v857_v29 = vmul.f32 %v2390_v25, %v853_v27 }
 0x16c   : > { %v861_v30 = vadd.f32 %v2391_v28, %v857_v29 }
 0x16e   : > { %v862_v31 = vpack.c.bf16 %v861_v30, %v861_v30 }
 0x170   : > { %2096 = vmatmul.msk.bf16.vlgmr.msra.gmra.mxu1 %vm824_vm0, %v862_v31 }
 0x1ed   : > { %v895_v33 = vpop.f32.mrf.mxu1 }
 0x1ee   : > { %v896_v34 = vadd.f32 %v2392_v32, %v895_v33 }
 0x1f0   : > { %v899_v35 = vmul.f32 0.35355338, %v896_v34  ;;  %v901_v36 = vpack.c.bf16 %v896_v34, %v896_v34 }
 0x1f2   : > { %v900_v37 = vpack.c.bf16 %v899_v35, %v899_v35  ;;  %v904_v38 = vunpack.c.l.b16 %v901_v36 }
 0x1f4   : > { %v3234_v39 = vpack.c.b16 %v904_v38, %v904_v38  ;;  %v978_v40 = vunpack.c.l.b16 %v900_v37 }
 0x1f5   : > { %v897_v41 = vpop.f32.mrf.mxu1 }
 0x1f6   : > { %906 = vrot.lane.b32.xlu1 %v3234_v39, %s2941_s3  ;;  %v979_v42 = vpack.c.b16 %v978_v40, %v978_v40 }
 0x1f8   : > { %1122 = vrot.lane.b32.xlu0 %v979_v42, %s2942_s20  ;;  %980 = vrot.lane.b32.xlu2 %v979_v42, %s2943_s23 }
 0x1fe   : > { %982 = vrot.lane.b32.xlu1 %v3234_v39, %s2944_s25 }
 0x200   : > { %1124 = vrot.lane.b32.xlu2 %v3234_v39, %s2945_s6 }
 0x206   : > { %1053 = vrot.lane.b32.xlu1 %v3234_v39, %s2946_s21 }
 0x208   : > { %1051 = vrot.lane.b32.xlu2 %v979_v42, %s2947_s29 }
 0x252   : > { %v981_v43 = vpop.permute.xlu2 %980 }
 0x25a   : > { %v1125_v46 = vpop.permute.xlu2 %1124 }
 0x25b   : > { %v1130_v49 = vsel %vm908_vm5, %v1125_v46, 0 }
 0x262   : > { %v1052_v52 = vpop.permute.xlu2 %1051 }
 0x268   : > { %v907_v44 = vpop.permute.xlu1 %906 }
 0x269   : > { %v913_v45 = vsel %vm908_vm5, %v907_v44, 0 }
 0x26a   : > { %922 = vmatpush.bf16.xpose.msrb.mxu1 %v913_v45  ;;  %v1123_v53 = vpop.permute.xlu0 %1122 }
 0x270   : > { %v983_v47 = vpop.permute.xlu1 %982 }
 0x271   : > { %2097 = vmatmul.msk.bf16.vlgmr.msrb.gmra.mxu1 %vm908_vm5, %v900_v37  ;;  %v988_v48 = vsel %vm908_vm5, %v983_v47, 0 }
 0x272   : > { %997 = vmatpush.bf16.xpose.msra.mxu3 %v988_v48 }
 0x278   : > { %v1054_v50 = vpop.permute.xlu1 %1053 }
 0x279   : > { %2099 = vmatmul.msk.bf16.vlgmr.msra.gmra.mxu3 %vm908_vm5, %v981_v43  ;;  %v1059_v51 = vsel %vm908_vm5, %v1054_v50, 0 }
 0x27a   : > { %1139 = vmatpush.bf16.xpose.msrb.mxu3 %v1130_v49  ;;  %1068 = vmatpush.bf16.xpose.msra.mxu0 %v1059_v51 }
 0x281   : > { %2101 = vmatmul.msk.bf16.vlgmr.msra.gmra.mxu0 %vm908_vm5, %v1052_v52 }
 0x289   : > { %2103 = vmatmul.msk.bf16.vlgmr.msrb.gmra.mxu3 %vm908_vm5, %v1123_v53 }
 0x2ee   : > { %v924_v60 = vpop.f32.mrf.mxu1 }
 0x2ef   : > { %v925_v61 = vadd.f32 %v924_v60, %v902_v59 }
 0x2f1   : > { %v928_v62 = vsel %vm819_vm6, %v925_v61, -inf }
 0x2f2   : > { %v929_v63 = vsel %vm908_vm5, %v928_v62, -inf }
 0x2f3   : > { %930 = vmax.xlane.f32.xlu1 %v929_v63 }
 0x2f6   : > { %v926_v1 = vpop.f32.mrf.mxu1 }
 0x2fc   : > { %v999_v3 = vpop.f32.mrf.mxu3 }
 0x2fd   : > { %v1000_v4 = vadd.f32 %v999_v3, %v976_v2 }
 0x2fe   : > { %v1070_v6 = vpop.f32.mrf.mxu0 }
 0x2ff   : > { %v1003_v7 = vsel %vm819_vm6, %v1000_v4, -inf  ;;  %v1071_v10 = vadd.f32 %v1070_v6, %v1050_v5 }
 0x300   : > { %v1004_v9 = vsel %vm908_vm5, %v1003_v7, -inf }
 0x301   : > { %1005 = vmax.xlane.f32.xlu2 %v1004_v9  ;;  %v1074_v12 = vsel %vm819_vm6, %v1071_v10, -inf }
 0x302   : > { %v1075_v14 = vsel %vm908_vm5, %v1074_v12, -inf }
 0x304   : > { %v1001_v11 = vpop.f32.mrf.mxu3 }
 0x306   : > { %v1072_v13 = vpop.f32.mrf.mxu0 }
 0x309   : > { %1076 = vmax.xlane.f32.xlu2 %v1075_v14 }
 0x30c   : > { %v1141_v16 = vpop.f32.mrf.mxu3 }
 0x30d   : > { %v1142_v17 = vadd.f32 %v1141_v16, %v1121_v15 }
 0x30f   : > { %v1145_v18 = vsel %vm819_vm6, %v1142_v17, -inf }
 0x310   : > { %v1146_v19 = vsel %vm908_vm5, %v1145_v18, -inf }
 0x311   : > { %1147 = vmax.xlane.f32.xlu0 %v1146_v19 }
 0x314   : > { %v1143_v20 = vpop.f32.mrf.mxu3 }
 0x366   : > { %v931_v21 = vpop.xlane.xlu1 %930 }
 0x367   : > { %v932_v22 = vsub.f32 %v928_v62, %v931_v21 }
 0x369   : > { %v933_v23 = vmul.f32 1.442695, %v932_v22 }
 0x36b   : > { %2406 = vpow2.f32 %v933_v23 }
 0x371   : > { %v2407_v24 = vpop.eup %2406 }
 0x372   : > { %v935_v25 = vsel %vm908_vm5, %v2407_v24, 0.0 }
 0x373   : > { %936 = vadd.xlane.f32.xlu1 %v935_v25 }
 0x374   : > { %v1006_v26 = vpop.xlane.xlu2 %1005 }
 0x375   : > { %v1007_v27 = vsub.f32 %v1003_v7, %v1006_v26 }
 0x377   : > { %v1008_v28 = vmul.f32 1.442695, %v1007_v27 }
 0x379   : > { %2408 = vpow2.f32 %v1008_v28 }
 0x37c   : > { %v1077_v29 = vpop.xlane.xlu2 %1076 }
 0x37d   : > { %v1078_v30 = vsub.f32 %v1074_v12, %v1077_v29 }
 0x37f   : > { %v3264_v31 = vpop.eup %2408  ;;  %v1079_v32 = vmul.f32 1.442695, %v1078_v30 }
 0x380   : > { %v1010_v33 = vsel %vm908_vm5, %v3264_v31, 0.0 }
 0x381   : > { %2410 = vpow2.f32 %v1079_v32  ;;  %1011 = vadd.xlane.f32.xlu2 %v1010_v33 }
 0x384   : > { %v1148_v34 = vpop.xlane.xlu0 %1147 }
 0x385   : > { %v1149_v35 = vsub.f32 %v1145_v18, %v1148_v34 }
 0x387   : > { %v3268_v36 = vpop.eup %2410  ;;  %v1150_v37 = vmul.f32 1.442695, %v1149_v35 }
 0x388   : > { %v1081_v38 = vsel %vm908_vm5, %v3268_v36, 0.0 }
 0x389   : > { %2412 = vpow2.f32 %v1150_v37  ;;  %1082 = vadd.xlane.f32.xlu0 %v1081_v38 }
 0x38c   : > { %954 = vrot.lane.b32.xlu1 %v3234_v39, %s2948_s24 }
 0x38f   : > { %v3274_v40 = vpop.eup %2412 }
 0x390   : > { %v1152_v41 = vsel %vm908_vm5, %v3274_v40, 0.0 }
 0x391   : > { %1153 = vadd.xlane.f32.xlu0 %v1152_v41 }
 0x394   : > { %1100 = vrot.lane.b32.xlu1 %v3234_v39, %s3527_s30  ;;  %s1842_s30 = sshll.u32 %s3288_s27, 4  ;;  %s1843_s30 = int_to_ptr.vmem [resolvable:$true] %s1842_s30 }
 0x399   : > { %1029 = vrot.lane.b32.xlu2 %v3234_v39, %s3526_s0 }
 0x3a5   : > { %1171 = vrot.lane.b32.xlu0 %v3234_v39, %s3528_s10 }
 0x3e6   : > { %v937_v42 = vpop.xlane.xlu1 %936 }
 0x3e7   : > { %2414 = vrcp.f32 %v937_v42  ;;  %v949_v46 = vand.u32 2147483648, %v937_v42  ;;  %v947_v48 = vand.u32 2147483647, %v937_v42  ;;  %vm943_vm8 = vweird.f32 %v937_v42 }
 0x3e9   : > { %v950_v51 = vor.u32 1.1754944e-38, %v949_v46  ;;  %vm948_vm10 = vcmp.eq.f32.partialorder %v947_v48, 8.507059e+37  ;;  %v2191_v48 = vld [vmem:[%s3506_s9 + $0x8] sm:$0xff] }
 0x3ea   : > { %1239 = vmatpush.bf16.msrb.mxu0 %v2191_v48 }
 0x3ed   : > { %v2415_v43 = vpop.eup %2414 }
 0x3ee   : > { %v939_v44 = vmul.f32 %v2415_v43, %v937_v42  ;;  %vm944_vm7 = vweird.f32 %v2415_v43 }
 0x3ef   : > { %vm945_vm9 = vmor %vm943_vm8, %vm944_vm7 }
 0x3f0   : > { %v940_v45 = vsub.f32 1.0, %v939_v44 }
 0x3f2   : > { %v941_v47 = vmul.f32 %v2415_v43, %v940_v45 }
 0x3f4   : > { %v942_v49 = vadd.f32 %v2415_v43, %v941_v47  ;;  %v1012_v50 = vpop.xlane.xlu2 %1011 }
 0x3f5   : > { %2416 = vrcp.f32 %v1012_v50  ;;  %v1024_v62 = vand.u32 2147483648, %v1012_v50  ;;  %v1022_v1 = vand.u32 2147483647, %v1012_v50  ;;  %vm1018_vm13 = vweird.f32 %v1012_v50 }
 0x3f6   : > { %v946_v39 = vsel %vm945_vm9, %v2415_v43, %v942_v49  ;;  %v2190_v49 = vld [vmem:[%s3506_s9] sm:$0xff] }
 0x3f7   : > { %v951_v52 = vsel %vm948_vm10, %v950_v51, %v946_v39  ;;  %v1025_v6 = vor.u32 1.1754944e-38, %v1024_v62  ;;  %vm1023_vm15 = vcmp.eq.f32.partialorder %v1022_v1, 8.507059e+37  ;;  %1240 = vmatpush.bf16.msrb.mxu0 %v2190_v49  ;;  %vm1205_vm10 = vcmask 130048  }
 0x3f8   : > { %v952_v53 = vmul.f32 %v2407_v24, %v951_v52 }
 0x3fa   : > { %1246 = vst.msk [vmem:[%s3288_s27] sm:$0xff] %vm908_vm5, %v952_v53  ;;  %v953_v2 = vpack.c.bf16 %v952_v53, %v952_v53 }
 0x3fb   : > { %v2417_v54 = vpop.eup %2416 }
 0x3fc   : > { %v1014_v55 = vmul.f32 %v2417_v54, %v1012_v50  ;;  %v1083_v56 = vpop.xlane.xlu0 %1082  ;;  %v1030_v57 = vpop.permute.xlu2 %1029  ;;  %vm1019_vm12 = vweird.f32 %v2417_v54 }
 0x3fd   : > { %2418 = vrcp.f32 %v1083_v56  ;;  %v1035_v63 = vsel %vm959_vm11, %v1030_v57, 0  ;;  %vm1020_vm14 = vmor %vm1018_vm13, %vm1019_vm12  ;;  %v1095_v13 = vand.u32 2147483648, %v1083_v56  ;;  %v1093_v17 = vand.u32 2147483647, %v1083_v56 }
 0x3fe   : > { %v1015_v58 = vsub.f32 1.0, %v1014_v55  ;;  %v955_v59 = vpop.permute.xlu1 %954  ;;  %vm1089_vm2 = vweird.f32 %v1083_v56  ;;  %vm1207_vm12 = vcmask 195584  }
 0x3ff   : > { %v961_v60 = vsel %vm959_vm11, %v955_v59, 0  ;;  %v1096_v20 = vor.u32 1.1754944e-38, %v1095_v13  ;;  %vm1094_vm4 = vcmp.eq.f32.partialorder %v1093_v17, 8.507059e+37 }
 0x400   : > { %v1016_v61 = vmul.f32 %v2417_v54, %v1015_v58  ;;  %970 = vmatpush.bf16.msra.mxu2 %v961_v60 }
 0x402   : > { %v1017_v3 = vadd.f32 %v2417_v54, %v1016_v61 }
 0x403   : > { %v2419_v4 = vpop.eup %2418  ;;  %2098 = vmatmul.msk.bf16.vlgmr.msra.gmra.mxu2 %vm908_vm5, %v953_v2 }
 0x404   : > { %1044 = vmatpush.bf16.msrb.mxu2 %v1035_v63  ;;  %v1021_v5 = vsel %vm1020_vm14, %v2417_v54, %v1017_v3  ;;  %v1085_v7 = vmul.f32 %v2419_v4, %v1083_v56  ;;  %v1154_v9 = vpop.xlane.xlu0 %1153  ;;  %vm1090_vm1 = vweird.f32 %v2419_v4  ;;  %v2393_v56 = vld [vmem:[#allocation14] ss:$0 sm:$0xff] }
 0x405   : > { %2420 = vrcp.f32 %v1154_v9  ;;  %v1026_v12 = vsel %vm1023_vm15, %v1025_v6, %v1021_v5  ;;  %vm1091_vm3 = vmor %vm1089_vm2, %vm1090_vm1  ;;  %v1166_v26 = vand.u32 2147483648, %v1154_v9  ;;  %v1164_v28 = vand.u32 2147483647, %v1154_v9 }
 0x406   : > { %v1086_v10 = vsub.f32 1.0, %v1085_v7  ;;  %v1101_v11 = vpop.permute.xlu1 %1100  ;;  %v1027_v15 = vmul.f32 %v3264_v31, %v1026_v12  ;;  %vm1160_vm7 = vweird.f32 %v1154_v9 }
 0x407   : > { %v1106_v14 = vsel %vm959_vm11, %v1101_v11, 0  ;;  %v1167_v32 = vor.u32 1.1754944e-38, %v1166_v26  ;;  %vm1165_vm9 = vcmp.eq.f32.partialorder %v1164_v28, 8.507059e+37 }
 0x408   : > { %v1087_v16 = vmul.f32 %v2419_v4, %v1086_v10  ;;  %1115 = vmatpush.bf16.msra.mxu1 %v1106_v14  ;;  %1247 = vst.msk [vmem:[%s3288_s27 + $0x8] sm:$0xff] %vm908_vm5, %v1027_v15  ;;  %v1028_v30 = vpack.c.bf16 %v1027_v15, %v1027_v15  ;;  %v2394_v15 = vld [vmem:[#allocation7] ss:$0 sm:$0xff] }
 0x40a   : > { %v1088_v18 = vadd.f32 %v2419_v4, %v1087_v16 }
 0x40b   : > { %v2421_v19 = vpop.eup %2420 }
 0x40c   : > { %v1092_v21 = vsel %vm1091_vm3, %v2419_v4, %v1088_v18  ;;  %v1156_v22 = vmul.f32 %v2421_v19, %v1154_v9  ;;  %vm1161_vm6 = vweird.f32 %v2421_v19  ;;  %v2193_v4 = vld [vmem:[%s3508_s11 + $0x8] sm:$0xff]  ;;  %v2395_v18 = vld [vmem:[#allocation8] ss:$0 sm:$0xff] }
 0x40d   : > { %v1097_v23 = vsel %vm1094_vm4, %v1096_v20, %v1092_v21  ;;  %vm1162_vm8 = vmor %vm1160_vm7, %vm1161_vm6  ;;  %1313 = vmatpush.bf16.msrb.mxu1 %v2193_v4 }
 0x40e   : > { %v1098_v24 = vmul.f32 %v3268_v36, %v1097_v23  ;;  %v1157_v25 = vsub.f32 1.0, %v1156_v22  ;;  %v2396_v22 = vld [vmem:[#allocation16] ss:$0 sm:$0xff] }
 0x410   : > { %v1158_v27 = vmul.f32 %v2421_v19, %v1157_v25  ;;  %v1099_v29 = vpack.c.bf16 %v1098_v24, %v1098_v24  ;;  %1248 = vst.msk [vmem:[%s3288_s27 + $0x10] sm:$0xff] %vm908_vm5, %v1098_v24 }
 0x412   : > { %v1159_v31 = vadd.f32 %v2421_v19, %v1158_v27  ;;  %2102 = vmatmul.msk.bf16.vlgmr.msra.gmra.mxu1 %vm908_vm5, %v1099_v29 }
 0x413   : > { %2100 = vmatmul.msk.bf16.vlgmr.msrb.gmra.mxu2 %vm908_vm5, %v1028_v30 }
 0x414   : > { %v1163_v33 = vsel %vm1162_vm8, %v2421_v19, %v1159_v31 }
 0x415   : > { %v1168_v34 = vsel %vm1165_vm9, %v1167_v32, %v1163_v33 }
 0x416   : > { %v1169_v35 = vmul.f32 %v3274_v40, %v1168_v34 }
 0x417   : > { %v1172_v36 = vpop.permute.xlu0 %1171 }
 0x418   : > { %v1177_v37 = vsel %vm959_vm11, %v1172_v36, 0  ;;  %1249 = vst.msk [vmem:[%s3288_s27 + $0x18] sm:$0xff] %vm908_vm5, %v1169_v35  ;;  %v1170_v38 = vpack.c.bf16 %v1169_v35, %v1169_v35 }
 0x419   : > { %1186 = vmatpush.bf16.msra.mxu2 %v1177_v37 }
 0x423   : > { %2104 = vmatmul.msk.bf16.vlgmr.msra.gmra.mxu2 %vm908_vm5, %v1170_v38 }
 0x486   : > { %v972_v41 = vpop.f32.mrf.mxu2 }
 0x48e   : > { %v974_v42 = vpop.f32.mrf.mxu2 }
 0x48f   : > { %v1117_v43 = vpop.f32.mrf.mxu1 }
 0x490   : > { %1197 = vrot.lane.b32.xlu1 %v1117_v43, %s2952_s28 }
 0x496   : > { %v1046_v44 = vpop.f32.mrf.mxu2 }
 0x497   : > { %1193 = vrot.lane.b32.xlu2 %v1046_v44, %s2953_s1  ;;  %v1119_v40 = vpop.f32.mrf.mxu1 }
 0x49e   : > { %v1048_v45 = vpop.f32.mrf.mxu2 }
 0x4a6   : > { %v1188_v46 = vpop.f32.mrf.mxu2 }
 0x4a7   : > { %1201 = vrot.lane.b32.xlu2 %v1188_v46, %s2954_s18 }
 0x4ae   : > { %v1190_v47 = vpop.f32.mrf.mxu2 }
 0x4f1   : > { %v1194_v50 = vpop.permute.xlu2 %1193 }
 0x4f2   : > { %v1204_v51 = vsel %vm908_vm5, %v972_v41, %v1194_v50 }
 0x501   : > { %v1202_v52 = vpop.permute.xlu2 %1201 }
 0x502   : > { %v1198_v39 = vpop.permute.xlu1 %1197 }
 0x503   : > { %v1206_v53 = vsel %vm1205_vm10, %v1204_v51, %v1198_v39 }
 0x504   : > { %v1208_v54 = vsel %vm1207_vm12, %v1206_v53, %v1202_v52 }
 0x505   : > { %v1209_v55 = vpack.c.bf16 %v1208_v54, %v1208_v54 }
 0x507   : > { %2113 = vmatmul.msk.bf16.vlgmr.msrb.gmra.mxu0 %vm824_vm0, %v1209_v55 }
 0x584   : > { %v1242_v57 = vpop.f32.mrf.mxu0 }
 0x585   : > { %v1243_v58 = vadd.f32 %v2393_v56, %v1242_v57 }
 0x587   : > { %v3323_v59 = vadd.f32 %v1243_v58, %v3217_v0  ;;  %v2192_v0 = vld [vmem:[%s3508_s11] sm:$0xff] }
 0x588   : > { %1314 = vmatpush.bf16.msrb.mxu1 %v2192_v0 }
 0x589   : > { %v1253_v60 = vsel %vm824_vm0, %v3323_v59, 0.0 }
 0x58a   : > { %1254 = vadd.xlane.f32.xlu0 %v1253_v60 }
 0x58c   : > { %v1244_v61 = vpop.f32.mrf.mxu0 }
 0x5fd   : > { %v1255_v62 = vpop.xlane.xlu0 %1254 }
 0x5fe   : > { %v1256_v63 = vmul.f32 %v1255_v62, %v3221_v8 }
 0x600   : > { %v1257_v1 = vsub.f32 %v3323_v59, %v1256_v63 }
 0x602   : > { %v1258_v2 = vmul.f32 %v1257_v1, %v1257_v1 }
 0x604   : > { %v1259_v3 = vsel %vm824_vm0, %v1258_v2, 0.0 }
 0x605   : > { %1260 = vadd.xlane.f32.xlu1 %v1259_v3 }
 0x678   : > { %v1261_v5 = vpop.xlane.xlu1 %1260 }
 0x679   : > { %v1262_v6 = vmul.f32 %v1261_v5, %v3221_v8 }
 0x67b   : > { %v1263_v7 = vadd.f32 1e-05, %v1262_v6 }
 0x67d   : > { %2422 = vrsqrt.f32 %v1263_v7  ;;  %vm1270_vm14 = vweird.f32 %v1263_v7 }
 0x683   : > { %v2423_v9 = vpop.eup %2422 }
 0x684   : > { %v1265_v10 = vmul.f32 %v2423_v9, %v1263_v7  ;;  %vm1271_vm13 = vweird.f32 %v2423_v9 }
 0x685   : > { %vm1272_vm15 = vmor %vm1270_vm14, %vm1271_vm13 }
 0x686   : > { %v1266_v11 = vmul.f32 %v2423_v9, %v1265_v10 }
 0x688   : > { %v1267_v12 = vmul.f32 0.5, %v1266_v11 }
 0x68a   : > { %v1268_v13 = vsub.f32 1.5, %v1267_v12 }
 0x68c   : > { %v1269_v14 = vmul.f32 %v2423_v9, %v1268_v13 }
 0x68e   : > { %v1273_v16 = vsel %vm1272_vm15, %v2423_v9, %v1269_v14 }
 0x68f   : > { %v1274_v17 = vmul.f32 %v1273_v16, %v1257_v1 }
 0x691   : > { %v1278_v19 = vmul.f32 %v2394_v15, %v1274_v17 }
 0x693   : > { %v1282_v20 = vadd.f32 %v2395_v18, %v1278_v19 }
 0x695   : > { %v1283_v21 = vpack.c.bf16 %v1282_v20, %v1282_v20 }
 0x697   : > { %2122 = vmatmul.msk.bf16.vlgmr.msrb.gmra.mxu1 %vm824_vm0, %v1283_v21 }
 0x714   : > { %v1316_v23 = vpop.f32.mrf.mxu1 }
 0x715   : > { %v1317_v24 = vadd.f32 %v2396_v22, %v1316_v23 }
 0x717   : > { %v1320_v25 = vmul.f32 0.35355338, %v1317_v24  ;;  %v1322_v26 = vpack.c.bf16 %v1317_v24, %v1317_v24 }
 0x719   : > { %v1321_v27 = vpack.c.bf16 %v1320_v25, %v1320_v25  ;;  %v1324_v28 = vunpack.c.l.b16 %v1322_v26 }
 0x71b   : > { %v3338_v29 = vpack.c.b16 %v1324_v28, %v1324_v28  ;;  %v1394_v30 = vunpack.c.l.b16 %v1321_v27 }
 0x71c   : > { %v1318_v31 = vpop.f32.mrf.mxu1 }
 0x71d   : > { %1536 = vrot.lane.b32.xlu0 %v3338_v29, %s2945_s6  ;;  %1326 = vrot.lane.b32.xlu2 %v3338_v29, %s2941_s3  ;;  %v1395_v32 = vpack.c.b16 %v1394_v30, %v1394_v30  ;;  %s3560_s3 = smov 40  }
 0x71f   : > { %1534 = vrot.lane.b32.xlu1 %v1395_v32, %s2942_s20  ;;  %s3561_s20 = smov 48  }
 0x725   : > { %1398 = vrot.lane.b32.xlu2 %v3338_v29, %s2944_s25 }
 0x72d   : > { %1467 = vrot.lane.b32.xlu2 %v3338_v29, %s2946_s21 }
 0x735   : > { %1396 = vrot.lane.b32.xlu2 %v1395_v32, %s2943_s23  ;;  %s3562_s23 = smov 56  }
 0x73d   : > { %1465 = vrot.lane.b32.xlu2 %v1395_v32, %s2947_s29 }
 0x777   : > { %v1327_v33 = vpop.permute.xlu2 %1326 }
 0x778   : > { %v1332_v34 = vsel %vm908_vm5, %v1327_v33, 0 }
 0x779   : > { %1341 = vmatpush.bf16.xpose.msra.mxu3 %v1332_v34 }
 0x77f   : > { %v1399_v35 = vpop.permute.xlu2 %1398 }
 0x780   : > { %v1404_v36 = vsel %vm908_vm5, %v1399_v35, 0  ;;  %2123 = vmatmul.msk.bf16.vlgmr.msra.gmra.mxu3 %vm908_vm5, %v1321_v27 }
 0x781   : > { %1413 = vmatpush.bf16.xpose.msra.mxu0 %v1404_v36 }
 0x787   : > { %v1468_v37 = vpop.permute.xlu2 %1467 }
 0x788   : > { %v1473_v38 = vsel %vm908_vm5, %v1468_v37, 0 }
 0x789   : > { %1482 = vmatpush.bf16.xpose.msrb.mxu3 %v1473_v38 }
 0x78f   : > { %v1537_v41 = vpop.permute.xlu0 %1536  ;;  %v1397_v42 = vpop.permute.xlu2 %1396 }
 0x790   : > { %v1542_v43 = vsel %vm908_vm5, %v1537_v41, 0  ;;  %2125 = vmatmul.msk.bf16.vlgmr.msra.gmra.mxu0 %vm908_vm5, %v1397_v42 }
 0x791   : > { %1551 = vmatpush.bf16.xpose.msrb.mxu0 %v1542_v43  ;;  %v1535_v40 = vpop.permute.xlu1 %1534 }
 0x797   : > { %v1466_v44 = vpop.permute.xlu2 %1465 }
 0x798   : > { %2127 = vmatmul.msk.bf16.vlgmr.msrb.gmra.mxu3 %vm908_vm5, %v1466_v44 }
 0x7a0   : > { %2129 = vmatmul.msk.bf16.vlgmr.msrb.gmra.mxu0 %vm908_vm5, %v1535_v40 }
 0x803   : > { %v1343_v45 = vpop.f32.mrf.mxu3 }
 0x804   : > { %v1347_v46 = vsel %vm908_vm5, %v1343_v45, -inf }
 0x805   : > { %1348 = vmax.xlane.f32.xlu2 %v1347_v46 }
 0x80b   : > { %v1345_v47 = vpop.f32.mrf.mxu3 }
 0x80d   : > { %v1415_v48 = vpop.f32.mrf.mxu0 }
 0x80e   : > { %v1419_v49 = vsel %vm908_vm5, %v1415_v48, -inf }
 0x80f   : > { %1420 = vmax.xlane.f32.xlu0 %v1419_v49 }
 0x815   : > { %v1417_v50 = vpop.f32.mrf.mxu0 }
 0x81b   : > { %v1484_v51 = vpop.f32.mrf.mxu3 }
 0x81c   : > { %v1488_v39 = vsel %vm908_vm5, %v1484_v51, -inf }
 0x81d   : > { %v1553_v52 = vpop.f32.mrf.mxu0  ;;  %1489 = vmax.xlane.f32.xlu1 %v1488_v39 }
 0x81e   : > { %v1557_v53 = vsel %vm908_vm5, %v1553_v52, -inf }
 0x81f   : > { %1558 = vmax.xlane.f32.xlu2 %v1557_v53 }
 0x823   : > { %v1486_v54 = vpop.f32.mrf.mxu3 }
 0x825   : > { %v1555_v55 = vpop.f32.mrf.mxu0 }
 0x836   : > { %1372 = vrot.lane.b32.xlu1 %v3338_v29, %s2948_s24  ;;  %s2822_s24 = scalar_lea.hbm %s3563_s26, 64 }
 0x83e   : > { %1582 = vrot.lane.b32.xlu1 %v3338_v29, %s3560_s3 }
 0x878   : > { %v1349_v56 = vpop.xlane.xlu2 %1348 }
 0x879   : > { %v1350_v57 = vsub.f32 %v1343_v45, %v1349_v56 }
 0x87b   : > { %v1351_v58 = vmul.f32 1.442695, %v1350_v57 }
 0x87d   : > { %2424 = vpow2.f32 %v1351_v58 }
 0x882   : > { %v1421_v60 = vpop.xlane.xlu0 %1420 }
 0x883   : > { %v2425_v61 = vpop.eup %2424  ;;  %v1422_v62 = vsub.f32 %v1415_v48, %v1421_v60 }
 0x884   : > { %v1353_v63 = vsel %vm908_vm5, %v2425_v61, 0.0 }
 0x885   : > { %v1423_v1 = vmul.f32 1.442695, %v1422_v62  ;;  %1354 = vadd.xlane.f32.xlu2 %v1353_v63 }
 0x887   : > { %2426 = vpow2.f32 %v1423_v1 }
 0x88d   : > { %v3368_v2 = vpop.eup %2426 }
 0x88e   : > { %v1425_v3 = vsel %vm908_vm5, %v3368_v2, 0.0 }
 0x88f   : > { %1426 = vadd.xlane.f32.xlu0 %v1425_v3 }
 0x890   : > { %v1490_v4 = vpop.xlane.xlu1 %1489 }
 0x891   : > { %v1491_v0 = vsub.f32 %v1484_v51, %v1490_v4 }
 0x892   : > { %v1559_v5 = vpop.xlane.xlu2 %1558 }
 0x893   : > { %v1492_v6 = vmul.f32 1.442695, %v1491_v0  ;;  %v1560_v7 = vsub.f32 %v1553_v52, %v1559_v5 }
 0x895   : > { %2428 = vpow2.f32 %v1492_v6  ;;  %v1561_v9 = vmul.f32 1.442695, %v1560_v7 }
 0x897   : > { %2430 = vpow2.f32 %v1561_v9 }
 0x89b   : > { %v3372_v10 = vpop.eup %2428 }
 0x89c   : > { %v1494_v11 = vsel %vm908_vm5, %v3372_v10, 0.0 }
 0x89d   : > { %v3376_v12 = vpop.eup %2430  ;;  %1495 = vadd.xlane.f32.xlu2 %v1494_v11 }
 0x89e   : > { %v1563_v13 = vsel %vm908_vm5, %v3376_v12, 0.0 }
 0x89f   : > { %1564 = vadd.xlane.f32.xlu0 %v1563_v13 }
 0x8a8   : > { %v1373_v14 = vpop.permute.xlu1 %1372 }
 0x8a9   : > { %v1378_v15 = vsel %vm959_vm11, %v1373_v14, 0 }
 0x8aa   : > { %1387 = vmatpush.bf16.msrb.mxu2 %v1378_v15 }
 0x8b0   : > { %v1583_v40 = vpop.permute.xlu1 %1582 }
 0x8b1   : > { %v1588_v50 = vsel %vm959_vm11, %v1583_v40, 0 }
 0x8b3   : > { %1513 = vrot.lane.b32.xlu0 %v3338_v29, %s3561_s20 }
 0x8b5   : > { %1444 = vrot.lane.b32.xlu2 %v3338_v29, %s3562_s23  ;;  %s1816_s23 = scalar_lea.sflag [#allocation24], %s3285_s19 }
 0x8f8   : > { %v1355_v16 = vpop.xlane.xlu2 %1354 }
 0x8f9   : > { %2432 = vrcp.f32 %v1355_v16  ;;  %v1367_v21 = vand.u32 2147483648, %v1355_v16  ;;  %v1365_v23 = vand.u32 2147483647, %v1355_v16  ;;  %vm1361_vm2 = vweird.f32 %v1355_v16 }
 0x8fb   : > { %v1368_v25 = vor.u32 1.1754944e-38, %v1367_v21  ;;  %vm1366_vm4 = vcmp.eq.f32.partialorder %v1365_v23, 8.507059e+37  ;;  %v2194_v21 = vld [vmem:[%s3510_s13] sm:$0xff] }
 0x8ff   : > { %v2433_v17 = vpop.eup %2432 }
 0x900   : > { %v1357_v18 = vmul.f32 %v2433_v17, %v1355_v16  ;;  %vm1362_vm1 = vweird.f32 %v2433_v17 }
 0x901   : > { %vm1363_vm3 = vmor %vm1361_vm2, %vm1362_vm1 }
 0x902   : > { %v1358_v19 = vsub.f32 1.0, %v1357_v18  ;;  %v1427_v20 = vpop.xlane.xlu0 %1426 }
 0x903   : > { %2434 = vrcp.f32 %v1427_v20  ;;  %v1439_v34 = vand.u32 2147483648, %v1427_v20  ;;  %v1437_v35 = vand.u32 2147483647, %v1427_v20  ;;  %vm1433_vm7 = vweird.f32 %v1427_v20 }
 0x904   : > { %v1359_v22 = vmul.f32 %v2433_v17, %v1358_v19 }
 0x905   : > { %v1440_v41 = vor.u32 1.1754944e-38, %v1439_v34  ;;  %vm1438_vm9 = vcmp.eq.f32.partialorder %v1437_v35, 8.507059e+37 }
 0x906   : > { %v1360_v24 = vadd.f32 %v2433_v17, %v1359_v22 }
 0x908   : > { %v1364_v26 = vsel %vm1363_vm3, %v2433_v17, %v1360_v24 }
 0x909   : > { %v2435_v27 = vpop.eup %2434  ;;  %v1369_v28 = vsel %vm1366_vm4, %v1368_v25, %v1364_v26 }
 0x90a   : > { %v1370_v29 = vmul.f32 %v2425_v61, %v1369_v28  ;;  %v1429_v30 = vmul.f32 %v2435_v27, %v1427_v20  ;;  %vm1434_vm6 = vweird.f32 %v2435_v27  ;;  %v2195_v20 = vld [vmem:[%s3510_s13 + $0x8] sm:$0xff] }
 0x90b   : > { %vm1435_vm8 = vmor %vm1433_vm7, %vm1434_vm6  ;;  %1648 = vmatpush.bf16.msra.mxu3 %v2195_v20 }
 0x90c   : > { %v1430_v31 = vsub.f32 1.0, %v1429_v30  ;;  %v1371_v32 = vpack.c.bf16 %v1370_v29, %v1370_v29  ;;  %v2397_v29 = vld [vmem:[#allocation17] ss:$0 sm:$0xff] }
 0x90e   : > { %v1431_v33 = vmul.f32 %v2435_v27, %v1430_v31  ;;  %2124 = vmatmul.msk.bf16.vlgmr.msrb.gmra.mxu2 %vm908_vm5, %v1371_v32 }
 0x90f   : > { %1649 = vmatpush.bf16.msra.mxu3 %v2194_v21 }
 0x910   : > { %v1432_v36 = vadd.f32 %v2435_v27, %v1431_v33  ;;  %v1496_v37 = vpop.xlane.xlu2 %1495 }
 0x911   : > { %2436 = vrcp.f32 %v1496_v37  ;;  %v1508_v52 = vand.u32 2147483648, %v1496_v37  ;;  %v1506_v55 = vand.u32 2147483647, %v1496_v37  ;;  %vm1502_vm14 = vweird.f32 %v1496_v37 }
 0x912   : > { %v1436_v38 = vsel %vm1435_vm8, %v2435_v27, %v1432_v36  ;;  %v1565_v42 = vpop.xlane.xlu0 %1564 }
 0x913   : > { %2438 = vrcp.f32 %v1565_v42  ;;  %v1441_v43 = vsel %vm1438_vm9, %v1440_v41, %v1436_v38  ;;  %v1577_v60 = vand.u32 2147483648, %v1565_v42  ;;  %v1509_v61 = vor.u32 1.1754944e-38, %v1508_v52  ;;  %v2200_v52 = vld [vmem:[%s3514_s17 + $0x10] sm:$0xff] }
 0x914   : > { %v1442_v45 = vmul.f32 %v3368_v2, %v1441_v43  ;;  %v1575_v62 = vand.u32 2147483647, %v1565_v42  ;;  %vm1507_vm2 = vcmp.eq.f32.partialorder %v1506_v55, 8.507059e+37  ;;  %vm1571_vm3 = vweird.f32 %v1565_v42  ;;  %v2196_v43 = vld [vmem:[#allocation19] sm:$0xff]  ;;  %v2398_v55 = vld [vmem:[#allocation10] ss:$0 sm:$0xff] }
 0x915   : > { %v1578_v4 = vor.u32 1.1754944e-38, %v1577_v60 }
 0x916   : > { %v1443_v53 = vpack.c.bf16 %v1442_v45, %v1442_v45  ;;  %vm1576_vm6 = vcmp.eq.f32.partialorder %v1575_v62, 8.507059e+37  ;;  %v2204_v45 = vld [vmem:[%s3514_s17 + $0x30] sm:$0xff] }
 0x917   : > { %v2437_v44 = vpop.eup %2436 }
 0x918   : > { %v1498_v46 = vmul.f32 %v2437_v44, %v1496_v37  ;;  %v1445_v47 = vpop.permute.xlu2 %1444  ;;  %vm1503_vm13 = vweird.f32 %v2437_v44 }
 0x919   : > { %v2439_v48 = vpop.eup %2438  ;;  %v1450_v49 = vsel %vm959_vm11, %v1445_v47, 0  ;;  %vm1504_vm1 = vmor %vm1502_vm14, %vm1503_vm13  ;;  %v2203_v47 = vld [vmem:[%s3514_s17 + $0x28] sm:$0xff] }
 0x91a   : > { %v1499_v51 = vsub.f32 1.0, %v1498_v46  ;;  %v1567_v39 = vmul.f32 %v2439_v48, %v1565_v42  ;;  %1459 = vmatpush.bf16.msra.mxu1 %v1450_v49  ;;  %vm1572_vm15 = vweird.f32 %v2439_v48  ;;  %v2197_v42 = vld [vmem:[#allocation19 + $0x8] sm:$0xff] }
 0x91b   : > { %vm1573_vm4 = vmor %vm1571_vm3, %vm1572_vm15 }
 0x91c   : > { %v1500_v54 = vmul.f32 %v2437_v44, %v1499_v51  ;;  %v1568_v56 = vsub.f32 1.0, %v1567_v39 }
 0x91d   : > { %2126 = vmatmul.msk.bf16.vlgmr.msra.gmra.mxu1 %vm908_vm5, %v1443_v53 }
 0x91e   : > { %1597 = vmatpush.bf16.msrb.mxu1 %v1588_v50  ;;  %v1501_v57 = vadd.f32 %v2437_v44, %v1500_v54  ;;  %v1569_v58 = vmul.f32 %v2439_v48, %v1568_v56 }
 0x920   : > { %v1505_v63 = vsel %vm1504_vm1, %v2437_v44, %v1501_v57  ;;  %v1570_v1 = vadd.f32 %v2439_v48, %v1569_v58  ;;  %v2399_v58 = vld [vmem:[#allocation11] ss:$0 sm:$0xff] }
 0x921   : > { %v1510_v2 = vsel %vm1507_vm2, %v1509_v61, %v1505_v63  ;;  %v2199_v63 = vld [vmem:[%s3514_s17 + $0x8] sm:$0xff] }
 0x922   : > { %v1574_v3 = vsel %vm1573_vm4, %v2439_v48, %v1570_v1  ;;  %v1511_v0 = vmul.f32 %v3372_v10, %v1510_v2  ;;  %v2202_v48 = vld [vmem:[%s3514_s17 + $0x20] sm:$0xff] }
 0x923   : > { %v1579_v5 = vsel %vm1576_vm6, %v1578_v4, %v1574_v3  ;;  %v2198_v1 = vld [vmem:[%s3514_s17] sm:$0xff] }
 0x924   : > { %v1580_v9 = vmul.f32 %v3376_v12, %v1579_v5  ;;  %v1512_v11 = vpack.c.bf16 %v1511_v0, %v1511_v0  ;;  %v2400_v2 = vld [vmem:[#allocation20] ss:$0 sm:$0xff] }
 0x925   : > { %v1514_v6 = vpop.permute.xlu0 %1513 }
 0x926   : > { %v1519_v7 = vsel %vm959_vm11, %v1514_v6, 0  ;;  %v1581_v13 = vpack.c.bf16 %v1580_v9, %v1580_v9 }
 0x927   : > { %1528 = vmatpush.bf16.msra.mxu2 %v1519_v7 }
 0x92a   : > { %2128 = vmatmul.msk.bf16.vlgmr.msra.gmra.mxu2 %vm908_vm5, %v1512_v11 }
 0x92b   : > { %1718 = vmatpush.bf16.msrb.mxu2 %v2197_v42 }
 0x92d   : > { %2130 = vmatmul.msk.bf16.vlgmr.msrb.gmra.mxu1 %vm908_vm5, %v1581_v13 }
 0x92f   : > { %1719 = vmatpush.bf16.msrb.mxu2 %v2196_v43 }
 0x991   : > { %v1389_v14 = vpop.f32.mrf.mxu2 }
 0x999   : > { %v1391_v15 = vpop.f32.mrf.mxu2 }
 0x99a   : > { %v1461_v16 = vpop.f32.mrf.mxu1 }
 0x99b   : > { %1604 = vrot.lane.b32.xlu2 %v1461_v16, %s2953_s1 }
 0x9a2   : > { %v1463_v17 = vpop.f32.mrf.mxu1 }
 0x9aa   : > { %v1599_v10 = vpop.f32.mrf.mxu1 }
 0x9ab   : > { %1612 = vrot.lane.b32.xlu1 %v1599_v10, %s2954_s18  ;;  %s2206_s18 = sshll.u32 %s3082_s2, 5 }
 0x9ac   : > { %s1841_s3 = scalar_lea.hbm %s3563_s26, %s2206_s18 }
 0x9ad   : > { %v1530_v18 = vpop.f32.mrf.mxu2  ;;  %s1844_s20 = sshll.u32 %s1841_s3, 4  ;;  %s1845_s20 = int_to_ptr.hbm [resolvable:$true] %s1844_s20 }
 0x9ae   : > { %1608 = vrot.lane.b32.xlu0 %v1530_v18, %s2952_s28  ;;  %s2816_s25 = sshra.s32 %s1845_s20, 4  ;;  %s2817_s25 = int_to_ptr.hbm [resolvable:$true] %s2816_s25 }
 0x9af   : > { %s2818_s6 = scalar_lea.hbm %s2817_s25, 32  ;;  %p2823_p3 = scmp.lt.s32.totalorder %s2817_s25, %s3563_s26 }
 0x9b0   : > { %p2819_p0 = scmp.ne.s32.totalorder %s2817_s25, %s2818_s6  ;;  %p2824_p4 = scmp.lt.s32.totalorder %s2822_s24, %s2818_s6 }
 0x9b2   : > { %v1601_v12 = vpop.f32.mrf.mxu1  ;;  %p2820_p1 = pnand %p2819_p0, %p3099_p5  ;;  %p2825_p7 = por %p2824_p4, %p2823_p3 }
 0x9b4   : > { %p2821_p2 = pneg %p2820_p1 }
 0x9b5   : > { %v1532_v19 = vpop.f32.mrf.mxu2 }
 0x9b6   : > { %p2826_p8 = pnand %p2825_p7, %p2821_p2 }
 0x9f5   : > { %v1605_v22 = vpop.permute.xlu2 %1604 }
 0x9f6   : > { %v1615_v23 = vsel %vm908_vm5, %v1389_v14, %v1605_v22 }
 0xa1d   : > { %v1613_v25 = vpop.permute.xlu1 %1612 }
 0xa20   : > { %v1609_v24 = vpop.permute.xlu0 %1608 }
 0xa21   : > { %v1616_v26 = vsel %vm1205_vm10, %v1615_v23, %v1609_v24 }
 0xa22   : > { %v1617_v27 = vsel %vm1207_vm12, %v1616_v26, %v1613_v25 }
 0xa23   : > { %v1618_v28 = vpack.c.bf16 %v1617_v27, %v1617_v27 }
 0xa25   : > { %2139 = vmatmul.msk.bf16.vlgmr.msra.gmra.mxu3 %vm824_vm0, %v1618_v28 }
 0xaa8   : > { %v1651_v30 = vpop.f32.mrf.mxu3 }
 0xaa9   : > { %v1652_v31 = vadd.f32 %v2397_v29, %v1651_v30 }
 0xaab   : > { %v3409_v32 = vadd.f32 %v1652_v31, %v3323_v59  ;;  %v2205_v59 = vld [vmem:[%s3514_s17 + $0x38] sm:$0xff] }
 0xaac   : > { %1795 = vmatpush.bf16.msra.mxu0 %v2205_v59 }
 0xaad   : > { %v1658_v33 = vsel %vm824_vm0, %v3409_v32, 0.0 }
 0xaae   : > { %1659 = vadd.xlane.f32.xlu2 %v1658_v33 }
 0xab0   : > { %v1653_v34 = vpop.f32.mrf.mxu3  ;;  %1796 = vmatpush.bf16.msra.mxu0 %v2204_v45 }
 0xab4   : > { %1797 = vmatpush.bf16.msra.mxu0 %v2203_v47 }
 0xab8   : > { %1798 = vmatpush.bf16.msra.mxu0 %v2202_v48 }
 0xb21   : > { %v1660_v35 = vpop.xlane.xlu2 %1659 }
 0xb22   : > { %v1661_v36 = vmul.f32 %v1660_v35, %v3221_v8 }
 0xb24   : > { %v1662_v37 = vsub.f32 %v3409_v32, %v1661_v36 }
 0xb26   : > { %v1663_v38 = vmul.f32 %v1662_v37, %v1662_v37 }
 0xb28   : > { %v1664_v41 = vsel %vm824_vm0, %v1663_v38, 0.0 }
 0xb29   : > { %1665 = vadd.xlane.f32.xlu0 %v1664_v41 }
 0xb9c   : > { %v1666_v44 = vpop.xlane.xlu0 %1665 }
 0xb9d   : > { %v1667_v40 = vmul.f32 %v1666_v44, %v3221_v8  ;;  %v2201_v8 = vld [vmem:[%s3514_s17 + $0x18] sm:$0xff] }
 0xb9e   : > { %1799 = vmatpush.bf16.msra.mxu0 %v2201_v8 }
 0xb9f   : > { %v1668_v46 = vadd.f32 1e-05, %v1667_v40 }
 0xba1   : > { %2440 = vrsqrt.f32 %v1668_v46  ;;  %vm1675_vm11 = vweird.f32 %v1668_v46 }
 0xba2   : > { %1800 = vmatpush.bf16.msra.mxu0 %v2200_v52 }
 0xba6   : > { %1801 = vmatpush.bf16.msra.mxu0 %v2199_v63 }
 0xba7   : > { %v2441_v49 = vpop.eup %2440 }
 0xba8   : > { %v1670_v50 = vmul.f32 %v2441_v49, %v1668_v46  ;;  %vm1676_vm5 = vweird.f32 %v2441_v49 }
 0xba9   : > { %vm1677_vm10 = vmor %vm1675_vm11, %vm1676_vm5 }
 0xbaa   : > { %v1671_v51 = vmul.f32 %v2441_v49, %v1670_v50  ;;  %1802 = vmatpush.bf16.msra.mxu0 %v2198_v1 }
 0xbac   : > { %v1672_v39 = vmul.f32 0.5, %v1671_v51 }
 0xbae   : > { %v1673_v53 = vsub.f32 1.5, %v1672_v39 }
 0xbb0   : > { %v1674_v54 = vmul.f32 %v2441_v49, %v1673_v53 }
 0xbb2   : > { %v1678_v56 = vsel %vm1677_vm10, %v2441_v49, %v1674_v54 }
 0xbb3   : > { %v1679_v57 = vmul.f32 %v1678_v56, %v1662_v37 }
 0xbb5   : > { %v1683_v60 = vmul.f32 %v2398_v55, %v1679_v57 }
 0xbb7   : > { %v1687_v61 = vadd.f32 %v2399_v58, %v1683_v60 }
 0xbb9   : > { %v1688_v62 = vpack.c.bf16 %v1687_v61, %v1687_v61 }
 0xbbb   : > { %2148 = vmatmul.msk.bf16.vlgmr.msrb.gmra.mxu2 %vm824_vm0, %v1688_v62 }
 0xc3e   : > { %v1721_v3 = vpop.f32.mrf.mxu2 }
 0xc3f   : > { %v1722_v4 = vadd.f32 %v2400_v2, %v1721_v3 }
 0xc41   : > { %v1725_v0 = vmax.f32 %v1722_v4, 0.0 }
 0xc43   : > { %v1726_v5 = vpack.c.bf16 %v1725_v0, %v1725_v0 }
 0xc45   : > { %1803 = vmatmul.bf16.vlgmr.msra.gmra.mxu0 %v1726_v5 }
 0xc46   : > { %v1723_v6 = vpop.f32.mrf.mxu2 }
 0xc47   : > { %2829 = shalt.err (!%p2826_p8)
}
 0xc48   : > { %s2955_s18 = smov 128   ;;  %s2085_s0 = sshll.u32 %s3285_s19, 3 }
 0xc49   : > { %2256 = dma.vmem_to_hbm [thread:$0]  (%p3099_p5), %s1843_s30, 512, %s1845_s20, %s1816_s23, %s2955_s18, %s2955_s18, %s2953_s1  }
 0xc4a   : > { %s2183_s10 = sshll.u32 %s3082_s2, 3  ;;  %s3564_s29 = sld [smem:[#allocation49_spill]] }
 0xc4b   : > { %s3565_s6 = sld [smem:[#allocation50_spill]]  ;;  %s801_s28 = scalar_lea.vmem [#allocation22], %s2085_s0 }
 0xc4c   : > { %s1828_s5 = sshll.u32 %s801_s28, 4  ;;  %s1811_s2 = scalar_lea.sflag [#allocation4], %s3285_s19  ;;  %s1829_s5 = int_to_ptr.vmem [resolvable:$true] %s1828_s5 }
 0xc50   : > { %v2401_v7 = vld [vmem:[%s3564_s29] ss:$0 sm:$0xff] }
 0xc51   : > { %s1826_s24 = scalar_lea.hbm %s3565_s6, %s2183_s10  ;;  %s2850_s18 = scalar_lea.hbm %s3565_s6, 16 }
 0xc52   : > { %s1830_s7 = sshll.u32 %s1826_s24, 4  ;;  %s1831_s7 = int_to_ptr.hbm [resolvable:$true] %s1830_s7 }
 0xc53   : > { %s2844_s1 = sshra.s32 %s1831_s7, 4  ;;  %s2845_s1 = int_to_ptr.hbm [resolvable:$true] %s2844_s1 }
 0xc54   : > { %s2846_s30 = scalar_lea.hbm %s2845_s1, 8  ;;  %p2851_p12 = scmp.lt.s32.totalorder %s2845_s1, %s3565_s6 }
 0xc55   : > { %p2847_p9 = scmp.ne.s32.totalorder %s2845_s1, %s2846_s30  ;;  %p2852_p13 = scmp.lt.s32.totalorder %s2850_s18, %s2846_s30 }
 0xc57   : > { %p2848_p10 = pnand %p2847_p9, %p3099_p5  ;;  %p2853_p0 = por %p2852_p13, %p2851_p12 }
 0xc59   : > { %p2849_p11 = pneg %p2848_p10 }
 0xc5b   : > { %p2854_p1 = pnand %p2853_p0, %p2849_p11 }
 0xcc2   : > { %v1804_v9 = vpop.f32.mrf.mxu0 }
 0xcc3   : > { %v1805_v11 = vadd.f32 %v2401_v7, %v1804_v9 }
 0xcc5   : > { %v1808_v13 = vadd.f32 %v1805_v11, %v3409_v32 }
 0xcc7   : > { %1809 = vst.msk [vmem:[%s801_s28] sm:$0xff] %vm824_vm0, %v1808_v13 }
 0xcc8   : > { %2857 = shalt.err (!%p2854_p1)
}
 0xcc9   : > { %2255 = dma.vmem_to_hbm [thread:$0]  (%p3099_p5), %s1829_s5, 128, %s1831_s7, %s1811_s2  }
 0xcca   : > { %v1806_v14 = vpop.f32.mrf.mxu0 }
 0xccb PF: > { %s3566_s19 = sld [smem:[#allocation36_spill]] }
 0xccc   : > { %s3567_s3 = sld [smem:[#allocation34_spill]] }
 0xcd1   : > { %p2327_p2 = scmp.ge.s32.totalorder %s3566_s19, 2 }
 0xcd2   : > { %s1859_s29 = sand.u32 1, %s3567_s3  }
 0xcd3   : > { %p2297_p3 = pnand %p2327_p2, %p3103_p6  ;;  %s1860_s27 = scalar_lea.sflag [#allocation4], %s1859_s29 }
 0xcd5   : > { %p2298_p4 = pneg %p2297_p3 }
 0xcd7   : > { %2903 = dma.done.wait (%p2298_p4), %s1860_s27, 128  }
 0xcd8   : > { %2905 = vsyncadd (%p2298_p4), %s1860_s27, 4294967168  ;;  %s1870_s25 = scalar_lea.sflag [#allocation24], %s1859_s29 }
 0xcd9   : > { %2907 = dma.done.wait (%p2298_p4), %s1870_s25, 512  }
 0xcda   : > { %2909 = vsyncadd (%p2298_p4), %s1870_s25, 4294966784  ;;  %s3569_s24 = sld [smem:[#allocation37_spill]]  ;;  %s3572_s1 = smov %s2916_s22 }
 0xcdb   : > { %s3570_s4 = sld [smem:[#allocation35_spill]] }
 0xcdc   : > { %s3571_s23 = sld [smem:[#allocation38_spill]] }
 0xce0   : > { %p41_p5 = scmp.ge.s32.totalorder %s3569_s24, 4  }
 0xce1   : > { %s3573_s22 = smov %s3570_s4 }
 0xce2   :  { %43 = sbr.rel (!%p41_p5) target bundleno = 25 (0x19), region = 197 }
 0xce7   :  { %1876 = vsyncpa [#allocation3], 1 }
 0xce8   :  { %1878 = vsyncpa [#allocation3 + $0x1], 1 }
 0xce9   :  { %1879 = vsyncpa [#allocation6], 1 }
 0xcea   :  { %1880 = vsyncpa [#allocation9], 1 }
 0xceb   :  { %1881 = vsyncpa [#allocation12], 1 }
 0xcec   :  { %1882 = vsyncpa [#allocation15], 1 }
 0xced   :  { %1883 = vsyncpa [#allocation18], 1 }
 0xcee   :  { %1884 = vsyncpa [#allocation21], 1 }
 0xcef   :  { %1885 = vsyncpa [#allocation4], 1 }
 0xcf0   :  { %1887 = vsyncpa [#allocation4 + $0x1], 1 }
 0xcf1   :  { %1888 = vsyncpa [#allocation24], 1 }
 0xcf2   :  { %1890 = vsyncpa [#allocation24 + $0x1], 1 }

</bundles_post_ra>
